<compile_context>
chip_gen: v6e
topology: v6e:2x2x1
jax: 0.10.0
libtpu: 0.0.40
codegen_flags: <defaults>
</compile_context>

<pallas_src>
import functools

import numpy as np
import jax
import jax.numpy as jnp
from jax.experimental import pallas as pl
from jax.experimental.pallas import tpu as pltpu

HEADS = 4
OUT_CH = 128
DH = HEADS * OUT_CH            # 512
GINE_EPS = 0.0                 # GINEConv default (train_eps=False)
POOL_RATIO = 0.8
TM_CAP = 512                   # row-tile cap; sized to fit v7x 64 MiB VMEM with headroom


def _round_up(v, m):
    return (v + m - 1) // m * m


# ----------------------------------------------------------------------------
# Pallas kernels (fused, row-tiled)
# ----------------------------------------------------------------------------
def _dec_kernel(x_ref, w1_ref, b1_ref, w2_ref, b2_ref, o_ref):
    """Edge decoder: relu(relu(x@w1+b1)@w2+b2).  bf16 MXU, f32 accumulate."""
    x = x_ref[...].astype(jnp.bfloat16)
    h = jnp.dot(x, w1_ref[...], preferred_element_type=jnp.float32) + b1_ref[...]
    h = jnp.maximum(h, 0.0)
    h = jnp.dot(h.astype(jnp.bfloat16), w2_ref[...],
                preferred_element_type=jnp.float32) + b2_ref[...]
    o_ref[...] = jnp.maximum(h, 0.0)


def _gine_kernel(x_ref, a_ref, w1_ref, b1_ref, w2_ref, b2_ref, o_ref):
    """GINE: relu( mlp2( relu( mlp1( (1+eps)*x + aggr ) ) ) )  -- all in one pass."""
    h0 = (1.0 + GINE_EPS) * x_ref[...] + a_ref[...]
    h = jnp.dot(h0.astype(jnp.bfloat16), w1_ref[...],
                preferred_element_type=jnp.float32) + b1_ref[...]
    h = jnp.maximum(h, 0.0)
    h = jnp.dot(h.astype(jnp.bfloat16), w2_ref[...],
                preferred_element_type=jnp.float32) + b2_ref[...]
    o_ref[...] = jnp.maximum(h, 0.0)


def _proj_kernel(x_ref, w_ref, o_ref):
    """GAT node projection with folded attention columns (no bias, no activation)."""
    o_ref[...] = jnp.dot(x_ref[...].astype(jnp.bfloat16), w_ref[...],
                         preferred_element_type=jnp.float32)


def _score_kernel(x_ref, w_ref, o_ref):
    """TopKPooling score: tanh(<x, w/||w||>) -- VPU reduce + EUP tanh, no MXU."""
    s = jnp.sum(x_ref[...] * w_ref[...], axis=-1, keepdims=True)
    o_ref[...] = jnp.tanh(s)


def _head_kernel(x_ref, w1_ref, b1_ref, w2_ref, b2_ref, w3_ref, b3_ref, o_ref):
    """lin1+relu -> lin2+relu -> lin3 -> log_softmax, fused (f32, tiny M)."""
    h = jnp.dot(x_ref[...], w1_ref[...], preferred_element_type=jnp.float32) + b1_ref[...]
    h = jnp.maximum(h, 0.0)
    h = jnp.dot(h, w2_ref[...], preferred_element_type=jnp.float32) + b2_ref[...]
    h = jnp.maximum(h, 0.0)
    y = jnp.dot(h, w3_ref[...], preferred_element_type=jnp.float32) + b3_ref[...]
    m = jnp.max(y, axis=-1, keepdims=True)
    z = y - m
    o_ref[...] = z - jnp.log(jnp.sum(jnp.exp(z), axis=-1, keepdims=True))


def _row_tiled_pallas(kernel, row_inputs, pinned_inputs, out_cols, tm_cap=TM_CAP):
    """Run `kernel` over row-tiles of `row_inputs`; `pinned_inputs` (weights/biases)
    are whole-array blocks pinned at (0,0).  Output is f32 [M, out_cols]."""
    M = row_inputs[0].shape[0]
    if M <= tm_cap:
        tm = M                       # single full-rows block (always layout-legal)
    else:
        tm = tm_cap                  # multiple of 8; last tile handled by Pallas padding
    grid = (pl.cdiv(M, tm),)

    in_specs = []
    for a in row_inputs:
        in_specs.append(pl.BlockSpec((tm, a.shape[1]), lambda i: (i, 0)))
    for a in pinned_inputs:
        in_specs.append(pl.BlockSpec((a.shape[0], a.shape[1]), lambda i: (0, 0)))

    return pl.pallas_call(
        kernel,
        out_shape=jax.ShapeDtypeStruct((M, out_cols), jnp.float32),
        grid=grid,
        in_specs=in_specs,
        out_specs=pl.BlockSpec((tm, out_cols), lambda i: (i, 0)),
        compiler_params=pltpu.CompilerParams(dimension_semantics=("parallel",)),
    )(*row_inputs, *pinned_inputs)


# ----------------------------------------------------------------------------
# Kernel wrappers
# ----------------------------------------------------------------------------
def edge_decoder(params, ea):
    k_pad = params["dec1_w"].shape[0]                       # 128 (100 zero-padded)
    ea_p = jnp.pad(ea, ((0, 0), (0, k_pad - ea.shape[1])))
    return _row_tiled_pallas(
        _dec_kernel, [ea_p],
        [params["dec1_w"], params["dec1_b"], params["dec2_w"], params["dec2_b"]],
        out_cols=params["dec2_w"].shape[1])


def pallas_gine(params, x, aggr):
    return _row_tiled_pallas(
        _gine_kernel, [x, aggr],
        [params["mlp1_w"], params["mlp1_b"], params["mlp2_w"], params["mlp2_b"]],
        out_cols=params["mlp2_w"].shape[1])


def pallas_gat_proj(params, x):
    w = params["gat_w_ext"]
    return _row_tiled_pallas(_proj_kernel, [x], [w], out_cols=w.shape[1])


def pallas_score(x, w):
    w_n = (w / jnp.linalg.norm(w)).reshape(1, -1).astype(jnp.float32)
    return _row_tiled_pallas(_score_kernel, [x], [w_n], out_cols=1)[:, 0]


def pallas_head(params, x):
    return _row_tiled_pallas(
        _head_kernel, [x],
        [params["lin1_w"], params["lin1_b"], params["lin2_w"], params["lin2_b"],
         params["lin3_w"], params["lin3_b"]],
        out_cols=params["lin3_w"].shape[1])


# ----------------------------------------------------------------------------
# Graph glue (device-side, jit-friendly; masks instead of dynamic shapes)
# ----------------------------------------------------------------------------
def topk_mask(score, batch, node_mask, ratio, num_graphs):
    """Per-graph top-ceil(ratio * n_alive) over alive nodes; returns keep mask."""
    s = jnp.where(node_mask, score, -jnp.inf)
    order = jnp.lexsort((-s, batch))                     # group by graph, score desc
    pos = jnp.argsort(order)                             # position of each node in order
    counts = jax.ops.segment_sum(jnp.ones_like(batch), batch, num_segments=num_graphs)
    start = jnp.cumsum(counts) - counts                  # graph block offsets
    rank = pos - start[batch]                            # rank within own graph
    n_alive = jax.ops.segment_sum(node_mask.astype(jnp.int32), batch,
                                  num_segments=num_graphs)
    k = jnp.ceil(ratio * n_alive.astype(jnp.float32)).astype(jnp.int32)
    return (rank < k[batch]) & node_mask


def masked_gmp(x, batch, mask, num_graphs):
    m = jax.ops.segment_max(jnp.where(mask[:, None], x, -jnp.inf), batch,
                            num_segments=num_graphs)
    return jnp.where(jnp.isfinite(m), m, 0.0)            # guard empty graphs


def masked_gap(x, batch, mask, num_graphs):
    s = jax.ops.segment_sum(jnp.where(mask[:, None], x, 0.0), batch,
                            num_segments=num_graphs)
    cnt = jax.ops.segment_sum(mask.astype(jnp.float32), batch, num_segments=num_graphs)
    return s / jnp.maximum(cnt, 1.0)[:, None]


def gat_conv(params, x, edge_index, edge_mask, node_mask):
    """GATConv(512->128, heads=4, concat) on the masked (pooled) graph."""
    N = x.shape[0]
    xp_ext = pallas_gat_proj(params, x)                  # [N, 640]
    xp = xp_ext[:, :DH].reshape(N, HEADS, OUT_CH)
    a_src = xp_ext[:, DH:DH + HEADS]                     # folded attention columns
    a_dst = xp_ext[:, DH + HEADS:DH + 2 * HEADS]

    loops = jnp.arange(N, dtype=edge_index.dtype)        # self-loops on alive nodes
    src = jnp.concatenate([edge_index[0], loops])
    dst = jnp.concatenate([edge_index[1], loops])
    emask = jnp.concatenate([edge_mask, node_mask])

    alpha = jax.nn.leaky_relu(a_src[src] + a_dst[dst], negative_slope=0.2)
    alpha = jnp.where(emask[:, None], alpha, -jnp.inf)
    amax = jax.ops.segment_max(alpha, dst, num_segments=N)
    amax = jnp.where(jnp.isfinite(amax), amax, 0.0)
    p = jnp.where(emask[:, None], jnp.exp(alpha - amax[dst]), 0.0)
    denom = jax.ops.segment_sum(p, dst, num_segments=N)
    alpha_n = p / jnp.maximum(denom, 1e-16)[dst]

    out = jax.ops.segment_sum(alpha_n[:, :, None] * xp[src], dst, num_segments=N)
    return out.reshape(N, DH) + params["gat_b"]


# ----------------------------------------------------------------------------
# Full forward (Net.forward, eval mode) -- single jitted program, no host syncs
# ----------------------------------------------------------------------------
@functools.partial(jax.jit, static_argnames=("num_graphs",))
def net_forward(params, x, edge_index, batch, edge_attr, num_graphs):
    N = x.shape[0]
    src, dst = edge_index[0], edge_index[1]

    # edge-attr decoder (fused dec1+dec2)
    ea = edge_decoder(params, edge_attr)                                  # [E, 32]

    # GINEConv + relu: message relu(x_j + e_ji) fused by XLA into gather/scatter,
    # (1+eps)*x + aggr fused into the mlp kernel prologue.
    msg = jax.nn.relu(x[src] + ea)
    aggr = jax.ops.segment_sum(msg, dst, num_segments=N)
    x = pallas_gine(params, x, aggr)                                      # [N, 512]

    # pool1 + readout 1
    score1 = pallas_score(x, params["pool1_w"])
    keep1 = topk_mask(score1, batch, jnp.ones((N,), dtype=bool), POOL_RATIO, num_graphs)
    x = jnp.where(keep1[:, None], x * score1[:, None], 0.0)
    edge_mask = keep1[src] & keep1[dst]
    x1 = jnp.concatenate([masked_gmp(x, batch, keep1, num_graphs),
                          masked_gap(x, batch, keep1, num_graphs)], axis=1)

    # GATConv + relu
    x = gat_conv(params, x, edge_index, edge_mask, keep1)
    x = jnp.where(keep1[:, None], jax.nn.relu(x), 0.0)                    # [N, 512]

    # pool2 + readout 2
    score2 = pallas_score(x, params["pool2_w"])
    keep2 = topk_mask(score2, batch, keep1, POOL_RATIO, num_graphs)
    x = jnp.where(keep2[:, None], x * score2[:, None], 0.0)
    x2 = jnp.concatenate([masked_gmp(x, batch, keep2, num_graphs),
                          masked_gap(x, batch, keep2, num_graphs)], axis=1)

    # head: lin1+relu -> dropout(id) -> lin2+relu -> dropout(id) -> lin3 -> log_softmax
    return pallas_head(params, x1 + x2)                                   # [G, 8]


# ----------------------------------------------------------------------------
# Deterministic parameter init (shapes from Net.__init__)
# ----------------------------------------------------------------------------
def _init_linear(key, fan_in, fan_out):
    k1, k2 = jax.random.split(key)
    bound = 1.0 / np.sqrt(fan_in)
    w = jax.random.uniform(k1, (fan_in, fan_out), jnp.float32, -bound, bound)
    b = jax.random.uniform(k2, (fan_out,), jnp.float32, -bound, bound)
    return w, b


def init_params(key):
    ks = jax.random.split(key, 12)
    p = {}

    w, b = _init_linear(ks[0], 100, 64)                     # dec1, K padded 100 -> 128
    p["dec1_w"] = jnp.pad(w, ((0, _round_up(100, 128) - 100), (0, 0))).astype(jnp.bfloat16)
    p["dec1_b"] = b.reshape(1, -1)
    w, b = _init_linear(ks[1], 64, 32)                      # dec2
    p["dec2_w"] = w.astype(jnp.bfloat16); p["dec2_b"] = b.reshape(1, -1)

    w, b = _init_linear(ks[2], 32, 128)                     # GINE mlp layer 1
    p["mlp1_w"] = w.astype(jnp.bfloat16); p["mlp1_b"] = b.reshape(1, -1)
    w, b = _init_linear(ks[3], 128, 512)                    # GINE mlp layer 2
    p["mlp2_w"] = w.astype(jnp.bfloat16); p["mlp2_b"] = b.reshape(1, -1)

    p["pool1_w"] = jax.random.uniform(ks[4], (512,), jnp.float32, -1.0, 1.0) / np.sqrt(512)
    p["pool2_w"] = jax.random.uniform(ks[5], (512,), jnp.float32, -1.0, 1.0) / np.sqrt(512)

    gat_w, _ = _init_linear(ks[6], 512, DH)                 # GAT lin (no bias)
    g = 1.0 / np.sqrt(OUT_CH)
    att_src = jax.random.uniform(ks[7], (HEADS, OUT_CH), jnp.float32, -g, g)
    att_dst = jax.random.uniform(ks[8], (HEADS, OUT_CH), jnp.float32, -g, g)
    # Fold attention projections into extra matmul columns: [512, 512+4+4] -> pad to 640.
    wh = gat_w.reshape(512, HEADS, OUT_CH)
    col_src = jnp.einsum("khd,hd->kh", wh, att_src)
    col_dst = jnp.einsum("khd,hd->kh", wh, att_dst)
    w_ext = jnp.concatenate([gat_w, col_src, col_dst], axis=1)
    pad = _round_up(w_ext.shape[1], 128) - w_ext.shape[1]
    p["gat_w_ext"] = jnp.pad(w_ext, ((0, 0), (0, pad))).astype(jnp.bfloat16)   # [512, 640]
    p["gat_b"] = jnp.zeros((DH,), jnp.float32)

    w, b = _init_linear(ks[9], 1024, 128); p["lin1_w"] = w; p["lin1_b"] = b.reshape(1, -1)
    w, b = _init_linear(ks[10], 128, 64);  p["lin2_w"] = w; p["lin2_b"] = b.reshape(1, -1)
    w, b = _init_linear(ks[11], 64, 8);    p["lin3_w"] = w; p["lin3_b"] = b.reshape(1, -1)
    return p


# ----------------------------------------------------------------------------
# Example run
# ----------------------------------------------------------------------------
if __name__ == "__main__":
    root = jax.random.PRNGKey(0)
    kp, kx, ke = jax.random.split(root, 3)
    params = init_params(kp)

    num_graphs = 2
    nodes_per_graph = 6
    N = num_graphs * nodes_per_graph
    batch = jnp.repeat(jnp.arange(num_graphs, dtype=jnp.int32), nodes_per_graph)

    # bidirectional ring edges inside each graph -> 24 edges total
    src_l, dst_l = [], []
    for g in range(num_graphs):
        base = g * nodes_per_graph
        for i in range(nodes_per_graph):
            a = base + i
            b = base + (i + 1) % nodes_per_graph
            src_l += [a, b]
            dst_l += [b, a]
    edge_index = jnp.array([src_l, dst_l], dtype=jnp.int32)

    x = jax.random.normal(kx, (N, 32), dtype=jnp.float32)
    edge_attr = jax.random.normal(ke, (edge_index.shape[1], 100), dtype=jnp.float32)

    out = net_forward(params, x, edge_index, batch, edge_attr, num_graphs=num_graphs)
    out = jax.block_until_ready(out)
    assert out.shape == (num_graphs, 8)
    assert bool(jnp.all(jnp.isfinite(out)))
    print("KERNEL_OK")
</pallas_src>

<mosaic_0001>
module attributes {stable_mosaic.version = 11 : i64} {
  func.func @_dec_kernel(%arg0: i32, %arg1: memref<24x128xf32, #tpu.memory_space<vmem>>, %arg2: memref<128x64xbf16, #tpu.memory_space<vmem>>, %arg3: memref<1x64xf32, #tpu.memory_space<vmem>>, %arg4: memref<64x32xbf16, #tpu.memory_space<vmem>>, %arg5: memref<1x32xf32, #tpu.memory_space<vmem>>, %arg6: memref<24x32xf32, #tpu.memory_space<vmem>>) attributes {dimension_semantics = [#tpu.dimension_semantics<parallel>], iteration_bounds = array<i64: 1>, scalar_prefetch = 0 : i64, scratch_operands = 0 : i64, tpu.core_type = #tpu.core_type<tc>, window_params = [{transform_indices = @transform_0, window_bounds = array<i64: 24, 128>}, {pipeline_mode = #tpu.pipeline_mode<synchronous>, transform_indices = @transform_1, window_bounds = array<i64: 128, 64>}, {pipeline_mode = #tpu.pipeline_mode<synchronous>, transform_indices = @transform_2, window_bounds = array<i64: 1, 64>}, {pipeline_mode = #tpu.pipeline_mode<synchronous>, transform_indices = @transform_3, window_bounds = array<i64: 64, 32>}, {pipeline_mode = #tpu.pipeline_mode<synchronous>, transform_indices = @transform_4, window_bounds = array<i64: 1, 32>}, {transform_indices = @transform_5, window_bounds = array<i64: 24, 32>}]} {
    %c0 = arith.constant 0 : index
    %c0_0 = arith.constant 0 : index
    %0 = vector.load %arg1[%c0, %c0_0] : memref<24x128xf32, #tpu.memory_space<vmem>>, vector<24x128xf32>
    %1 = arith.truncf %0 : vector<24x128xf32> to vector<24x128xbf16>
    %c0_1 = arith.constant 0 : index
    %c0_2 = arith.constant 0 : index
    %2 = vector.load %arg2[%c0_1, %c0_2] : memref<128x64xbf16, #tpu.memory_space<vmem>>, vector<128x64xbf16>
    %cst = arith.constant dense<0.000000e+00> : vector<24x64xf32>
    %3 = tpu.matmul %1, %2, %cst {dimension_numbers = #tpu.dot_dimension_numbers<[1], [0], [0], [1], [0, 0, 1, 1], [], []>} : vector<24x128xbf16>, vector<128x64xbf16>, vector<24x64xf32> -> vector<24x64xf32>
    %c0_3 = arith.constant 0 : index
    %c0_4 = arith.constant 0 : index
    %4 = vector.load %arg3[%c0_3, %c0_4] : memref<1x64xf32, #tpu.memory_space<vmem>>, vector<1x64xf32>
    %5 = vector.broadcast %4 : vector<1x64xf32> to vector<24x64xf32>
    %6 = arith.addf %3, %5 : vector<24x64xf32>
    %cst_5 = arith.constant 0.000000e+00 : f32
    %7 = vector.broadcast %cst_5 : f32 to vector<24x64xf32>
    %8 = arith.maximumf %6, %7 : vector<24x64xf32>
    %9 = arith.truncf %8 : vector<24x64xf32> to vector<24x64xbf16>
    %c0_6 = arith.constant 0 : index
    %c0_7 = arith.constant 0 : index
    %10 = vector.load %arg4[%c0_6, %c0_7] : memref<64x32xbf16, #tpu.memory_space<vmem>>, vector<64x32xbf16>
    %cst_8 = arith.constant dense<0.000000e+00> : vector<24x32xf32>
    %11 = tpu.matmul %9, %10, %cst_8 {dimension_numbers = #tpu.dot_dimension_numbers<[1], [0], [0], [1], [0, 0, 1, 1], [], []>} : vector<24x64xbf16>, vector<64x32xbf16>, vector<24x32xf32> -> vector<24x32xf32>
    %c0_9 = arith.constant 0 : index
    %c0_10 = arith.constant 0 : index
    %12 = vector.load %arg5[%c0_9, %c0_10] : memref<1x32xf32, #tpu.memory_space<vmem>>, vector<1x32xf32>
    %13 = vector.broadcast %12 : vector<1x32xf32> to vector<24x32xf32>
    %14 = arith.addf %11, %13 : vector<24x32xf32>
    %cst_11 = arith.constant 0.000000e+00 : f32
    %15 = vector.broadcast %cst_11 : f32 to vector<24x32xf32>
    %16 = arith.maximumf %14, %15 : vector<24x32xf32>
    %c0_12 = arith.constant 0 : index
    %c0_13 = arith.constant 0 : index
    %17 = vector.load %arg6[%c0_12, %c0_13] : memref<24x32xf32, #tpu.memory_space<vmem>>, vector<24x32xf32>
    tpu.vector_store %arg6[%c0_12, %c0_13], %16 {strides = array<i32>} : memref<24x32xf32, #tpu.memory_space<vmem>>, vector<24x32xf32>,
    return
  }
  func.func @transform_0(%arg0: i32) -> (i32, i32) {
    %c0_i32 = arith.constant 0 : i32
    %c0_i32_0 = arith.constant 0 : i32
    return %arg0, %c0_i32 : i32, i32
  }
  func.func @transform_1(%arg0: i32) -> (i32, i32) {
    %c0_i32 = arith.constant 0 : i32
    %c0_i32_0 = arith.constant 0 : i32
    %c0_i32_1 = arith.constant 0 : i32
    return %c0_i32, %c0_i32_0 : i32, i32
  }
  func.func @transform_2(%arg0: i32) -> (i32, i32) {
    %c0_i32 = arith.constant 0 : i32
    %c0_i32_0 = arith.constant 0 : i32
    %c0_i32_1 = arith.constant 0 : i32
    return %c0_i32, %c0_i32_0 : i32, i32
  }
  func.func @transform_3(%arg0: i32) -> (i32, i32) {
    %c0_i32 = arith.constant 0 : i32
    %c0_i32_0 = arith.constant 0 : i32
    %c0_i32_1 = arith.constant 0 : i32
    return %c0_i32, %c0_i32_0 : i32, i32
  }
  func.func @transform_4(%arg0: i32) -> (i32, i32) {
    %c0_i32 = arith.constant 0 : i32
    %c0_i32_0 = arith.constant 0 : i32
    %c0_i32_1 = arith.constant 0 : i32
    return %c0_i32, %c0_i32_0 : i32, i32
  }
  func.func @transform_5(%arg0: i32) -> (i32, i32) {
    %c0_i32 = arith.constant 0 : i32
    %c0_i32_0 = arith.constant 0 : i32
    return %arg0, %c0_i32 : i32, i32
  }
}

module attributes {stable_mosaic.version = 11 : i64} {
  func.func @_gine_kernel(%arg0: i32, %arg1: memref<12x32xf32, #tpu.memory_space<vmem>>, %arg2: memref<12x32xf32, #tpu.memory_space<vmem>>, %arg3: memref<32x128xbf16, #tpu.memory_space<vmem>>, %arg4: memref<1x128xf32, #tpu.memory_space<vmem>>, %arg5: memref<128x512xbf16, #tpu.memory_space<vmem>>, %arg6: memref<1x512xf32, #tpu.memory_space<vmem>>, %arg7: memref<12x512xf32, #tpu.memory_space<vmem>>) attributes {dimension_semantics = [#tpu.dimension_semantics<parallel>], iteration_bounds = array<i64: 1>, scalar_prefetch = 0 : i64, scratch_operands = 0 : i64, tpu.core_type = #tpu.core_type<tc>, window_params = [{transform_indices = @transform_0, window_bounds = array<i64: 12, 32>}, {transform_indices = @transform_1, window_bounds = array<i64: 12, 32>}, {pipeline_mode = #tpu.pipeline_mode<synchronous>, transform_indices = @transform_2, window_bounds = array<i64: 32, 128>}, {pipeline_mode = #tpu.pipeline_mode<synchronous>, transform_indices = @transform_3, window_bounds = array<i64: 1, 128>}, {pipeline_mode = #tpu.pipeline_mode<synchronous>, transform_indices = @transform_4, window_bounds = array<i64: 128, 512>}, {pipeline_mode = #tpu.pipeline_mode<synchronous>, transform_indices = @transform_5, window_bounds = array<i64: 1, 512>}, {transform_indices = @transform_6, window_bounds = array<i64: 12, 512>}]} {
    %c0 = arith.constant 0 : index
    %c0_0 = arith.constant 0 : index
    %0 = vector.load %arg1[%c0, %c0_0] : memref<12x32xf32, #tpu.memory_space<vmem>>, vector<12x32xf32>
    %cst = arith.constant 1.000000e+00 : f32
    %1 = vector.broadcast %cst : f32 to vector<12x32xf32>
    %2 = arith.mulf %1, %0 : vector<12x32xf32>
    %c0_1 = arith.constant 0 : index
    %c0_2 = arith.constant 0 : index
    %3 = vector.load %arg2[%c0_1, %c0_2] : memref<12x32xf32, #tpu.memory_space<vmem>>, vector<12x32xf32>
    %4 = arith.addf %2, %3 : vector<12x32xf32>
    %5 = arith.truncf %4 : vector<12x32xf32> to vector<12x32xbf16>
    %c0_3 = arith.constant 0 : index
    %c0_4 = arith.constant 0 : index
    %6 = vector.load %arg3[%c0_3, %c0_4] : memref<32x128xbf16, #tpu.memory_space<vmem>>, vector<32x128xbf16>
    %cst_5 = arith.constant dense<0.000000e+00> : vector<12x128xf32>
    %7 = tpu.matmul %5, %6, %cst_5 {dimension_numbers = #tpu.dot_dimension_numbers<[1], [0], [0], [1], [0, 0, 1, 1], [], []>} : vector<12x32xbf16>, vector<32x128xbf16>, vector<12x128xf32> -> vector<12x128xf32>
    %c0_6 = arith.constant 0 : index
    %c0_7 = arith.constant 0 : index
    %8 = vector.load %arg4[%c0_6, %c0_7] : memref<1x128xf32, #tpu.memory_space<vmem>>, vector<1x128xf32>
    %9 = vector.broadcast %8 : vector<1x128xf32> to vector<12x128xf32>
    %10 = arith.addf %7, %9 : vector<12x128xf32>
    %cst_8 = arith.constant 0.000000e+00 : f32
    %11 = vector.broadcast %cst_8 : f32 to vector<12x128xf32>
    %12 = arith.maximumf %10, %11 : vector<12x128xf32>
    %13 = arith.truncf %12 : vector<12x128xf32> to vector<12x128xbf16>
    %c0_9 = arith.constant 0 : index
    %c0_10 = arith.constant 0 : index
    %14 = vector.load %arg5[%c0_9, %c0_10] : memref<128x512xbf16, #tpu.memory_space<vmem>>, vector<128x512xbf16>
    %cst_11 = arith.constant dense<0.000000e+00> : vector<12x512xf32>
    %15 = tpu.matmul %13, %14, %cst_11 {dimension_numbers = #tpu.dot_dimension_numbers<[1], [0], [0], [1], [0, 0, 1, 1], [], []>} : vector<12x128xbf16>, vector<128x512xbf16>, vector<12x512xf32> -> vector<12x512xf32>
    %c0_12 = arith.constant 0 : index
    %c0_13 = arith.constant 0 : index
    %16 = vector.load %arg6[%c0_12, %c0_13] : memref<1x512xf32, #tpu.memory_space<vmem>>, vector<1x512xf32>
    %17 = vector.broadcast %16 : vector<1x512xf32> to vector<12x512xf32>
    %18 = arith.addf %15, %17 : vector<12x512xf32>
    %cst_14 = arith.constant 0.000000e+00 : f32
    %19 = vector.broadcast %cst_14 : f32 to vector<12x512xf32>
    %20 = arith.maximumf %18, %19 : vector<12x512xf32>
    %c0_15 = arith.constant 0 : index
    %c0_16 = arith.constant 0 : index
    %21 = vector.load %arg7[%c0_15, %c0_16] : memref<12x512xf32, #tpu.memory_space<vmem>>, vector<12x512xf32>
    tpu.vector_store %arg7[%c0_15, %c0_16], %20 {strides = array<i32>} : memref<12x512xf32, #tpu.memory_space<vmem>>, vector<12x512xf32>,
    return
  }
  func.func @transform_0(%arg0: i32) -> (i32, i32) {
    %c0_i32 = arith.constant 0 : i32
    %c0_i32_0 = arith.constant 0 : i32
    return %arg0, %c0_i32 : i32, i32
  }
  func.func @transform_1(%arg0: i32) -> (i32, i32) {
    %c0_i32 = arith.constant 0 : i32
    %c0_i32_0 = arith.constant 0 : i32
    return %arg0, %c0_i32 : i32, i32
  }
  func.func @transform_2(%arg0: i32) -> (i32, i32) {
    %c0_i32 = arith.constant 0 : i32
    %c0_i32_0 = arith.constant 0 : i32
    %c0_i32_1 = arith.constant 0 : i32
    return %c0_i32, %c0_i32_0 : i32, i32
  }
  func.func @transform_3(%arg0: i32) -> (i32, i32) {
    %c0_i32 = arith.constant 0 : i32
    %c0_i32_0 = arith.constant 0 : i32
    %c0_i32_1 = arith.constant 0 : i32
    return %c0_i32, %c0_i32_0 : i32, i32
  }
  func.func @transform_4(%arg0: i32) -> (i32, i32) {
    %c0_i32 = arith.constant 0 : i32
    %c0_i32_0 = arith.constant 0 : i32
    %c0_i32_1 = arith.constant 0 : i32
    return %c0_i32, %c0_i32_0 : i32, i32
  }
  func.func @transform_5(%arg0: i32) -> (i32, i32) {
    %c0_i32 = arith.constant 0 : i32
    %c0_i32_0 = arith.constant 0 : i32
    %c0_i32_1 = arith.constant 0 : i32
    return %c0_i32, %c0_i32_0 : i32, i32
  }
  func.func @transform_6(%arg0: i32) -> (i32, i32) {
    %c0_i32 = arith.constant 0 : i32
    %c0_i32_0 = arith.constant 0 : i32
    return %arg0, %c0_i32 : i32, i32
  }
}

module attributes {stable_mosaic.version = 11 : i64} {
  func.func @_score_kernel(%arg0: i32, %arg1: memref<12x512xf32, #tpu.memory_space<vmem>>, %arg2: memref<1x512xf32, #tpu.memory_space<vmem>>, %arg3: memref<12x1xf32, #tpu.memory_space<vmem>>) attributes {dimension_semantics = [#tpu.dimension_semantics<parallel>], iteration_bounds = array<i64: 1>, scalar_prefetch = 0 : i64, scratch_operands = 0 : i64, tpu.core_type = #tpu.core_type<tc>, window_params = [{transform_indices = @transform_0, window_bounds = array<i64: 12, 512>}, {pipeline_mode = #tpu.pipeline_mode<synchronous>, transform_indices = @transform_1, window_bounds = array<i64: 1, 512>}, {transform_indices = @transform_2, window_bounds = array<i64: 12, 1>}]} {
    %c0 = arith.constant 0 : index
    %c0_0 = arith.constant 0 : index
    %0 = vector.load %arg1[%c0, %c0_0] : memref<12x512xf32, #tpu.memory_space<vmem>>, vector<12x512xf32>
    %c0_1 = arith.constant 0 : index
    %c0_2 = arith.constant 0 : index
    %1 = vector.load %arg2[%c0_1, %c0_2] : memref<1x512xf32, #tpu.memory_space<vmem>>, vector<1x512xf32>
    %2 = vector.broadcast %1 : vector<1x512xf32> to vector<12x512xf32>
    %3 = arith.mulf %0, %2 : vector<12x512xf32>
    %cst = arith.constant dense<0.000000e+00> : vector<12xf32>
    %4 = vector.multi_reduction <add>, %3, %cst [1] : vector<12x512xf32> to vector<12xf32>
    %5 = vector.shape_cast %4 : vector<12xf32> to vector<12x1xf32>
    %6 = math.tanh %5 : vector<12x1xf32>
    %c0_3 = arith.constant 0 : index
    %c0_4 = arith.constant 0 : index
    %7 = vector.load %arg3[%c0_3, %c0_4] : memref<12x1xf32, #tpu.memory_space<vmem>>, vector<12x1xf32>
    tpu.vector_store %arg3[%c0_3, %c0_4], %6 {strides = array<i32>} : memref<12x1xf32, #tpu.memory_space<vmem>>, vector<12x1xf32>,
    return
  }
  func.func @transform_0(%arg0: i32) -> (i32, i32) {
    %c0_i32 = arith.constant 0 : i32
    %c0_i32_0 = arith.constant 0 : i32
    return %arg0, %c0_i32 : i32, i32
  }
  func.func @transform_1(%arg0: i32) -> (i32, i32) {
    %c0_i32 = arith.constant 0 : i32
    %c0_i32_0 = arith.constant 0 : i32
    %c0_i32_1 = arith.constant 0 : i32
    return %c0_i32, %c0_i32_0 : i32, i32
  }
  func.func @transform_2(%arg0: i32) -> (i32, i32) {
    %c0_i32 = arith.constant 0 : i32
    %c0_i32_0 = arith.constant 0 : i32
    return %arg0, %c0_i32 : i32, i32
  }
}

module attributes {stable_mosaic.version = 11 : i64} {
  func.func @_proj_kernel(%arg0: i32, %arg1: memref<12x512xf32, #tpu.memory_space<vmem>>, %arg2: memref<512x640xbf16, #tpu.memory_space<vmem>>, %arg3: memref<12x640xf32, #tpu.memory_space<vmem>>) attributes {dimension_semantics = [#tpu.dimension_semantics<parallel>], iteration_bounds = array<i64: 1>, scalar_prefetch = 0 : i64, scratch_operands = 0 : i64, tpu.core_type = #tpu.core_type<tc>, window_params = [{transform_indices = @transform_0, window_bounds = array<i64: 12, 512>}, {pipeline_mode = #tpu.pipeline_mode<synchronous>, transform_indices = @transform_1, window_bounds = array<i64: 512, 640>}, {transform_indices = @transform_2, window_bounds = array<i64: 12, 640>}]} {
    %c0 = arith.constant 0 : index
    %c0_0 = arith.constant 0 : index
    %0 = vector.load %arg1[%c0, %c0_0] : memref<12x512xf32, #tpu.memory_space<vmem>>, vector<12x512xf32>
    %1 = arith.truncf %0 : vector<12x512xf32> to vector<12x512xbf16>
    %c0_1 = arith.constant 0 : index
    %c0_2 = arith.constant 0 : index
    %2 = vector.load %arg2[%c0_1, %c0_2] : memref<512x640xbf16, #tpu.memory_space<vmem>>, vector<512x640xbf16>
    %cst = arith.constant dense<0.000000e+00> : vector<12x640xf32>
    %3 = tpu.matmul %1, %2, %cst {dimension_numbers = #tpu.dot_dimension_numbers<[1], [0], [0], [1], [0, 0, 1, 1], [], []>} : vector<12x512xbf16>, vector<512x640xbf16>, vector<12x640xf32> -> vector<12x640xf32>
    %c0_3 = arith.constant 0 : index
    %c0_4 = arith.constant 0 : index
    %4 = vector.load %arg3[%c0_3, %c0_4] : memref<12x640xf32, #tpu.memory_space<vmem>>, vector<12x640xf32>
    tpu.vector_store %arg3[%c0_3, %c0_4], %3 {strides = array<i32>} : memref<12x640xf32, #tpu.memory_space<vmem>>, vector<12x640xf32>,
    return
  }
  func.func @transform_0(%arg0: i32) -> (i32, i32) {
    %c0_i32 = arith.constant 0 : i32
    %c0_i32_0 = arith.constant 0 : i32
    return %arg0, %c0_i32 : i32, i32
  }
  func.func @transform_1(%arg0: i32) -> (i32, i32) {
    %c0_i32 = arith.constant 0 : i32
    %c0_i32_0 = arith.constant 0 : i32
    %c0_i32_1 = arith.constant 0 : i32
    return %c0_i32, %c0_i32_0 : i32, i32
  }
  func.func @transform_2(%arg0: i32) -> (i32, i32) {
    %c0_i32 = arith.constant 0 : i32
    %c0_i32_0 = arith.constant 0 : i32
    return %arg0, %c0_i32 : i32, i32
  }
}

module attributes {stable_mosaic.version = 11 : i64} {
  func.func @_head_kernel(%arg0: i32, %arg1: memref<2x1024xf32, #tpu.memory_space<vmem>>, %arg2: memref<1024x128xf32, #tpu.memory_space<vmem>>, %arg3: memref<1x128xf32, #tpu.memory_space<vmem>>, %arg4: memref<128x64xf32, #tpu.memory_space<vmem>>, %arg5: memref<1x64xf32, #tpu.memory_space<vmem>>, %arg6: memref<64x8xf32, #tpu.memory_space<vmem>>, %arg7: memref<1x8xf32, #tpu.memory_space<vmem>>, %arg8: memref<2x8xf32, #tpu.memory_space<vmem>>) attributes {dimension_semantics = [#tpu.dimension_semantics<parallel>], iteration_bounds = array<i64: 1>, scalar_prefetch = 0 : i64, scratch_operands = 0 : i64, tpu.core_type = #tpu.core_type<tc>, window_params = [{transform_indices = @transform_0, window_bounds = array<i64: 2, 1024>}, {pipeline_mode = #tpu.pipeline_mode<synchronous>, transform_indices = @transform_1, window_bounds = array<i64: 1024, 128>}, {pipeline_mode = #tpu.pipeline_mode<synchronous>, transform_indices = @transform_2, window_bounds = array<i64: 1, 128>}, {pipeline_mode = #tpu.pipeline_mode<synchronous>, transform_indices = @transform_3, window_bounds = array<i64: 128, 64>}, {pipeline_mode = #tpu.pipeline_mode<synchronous>, transform_indices = @transform_4, window_bounds = array<i64: 1, 64>}, {pipeline_mode = #tpu.pipeline_mode<synchronous>, transform_indices = @transform_5, window_bounds = array<i64: 64, 8>}, {pipeline_mode = #tpu.pipeline_mode<synchronous>, transform_indices = @transform_6, window_bounds = array<i64: 1, 8>}, {transform_indices = @transform_7, window_bounds = array<i64: 2, 8>}]} {
    %c0 = arith.constant 0 : index
    %c0_0 = arith.constant 0 : index
    %0 = vector.load %arg1[%c0, %c0_0] : memref<2x1024xf32, #tpu.memory_space<vmem>>, vector<2x1024xf32>
    %c0_1 = arith.constant 0 : index
    %c0_2 = arith.constant 0 : index
    %1 = vector.load %arg2[%c0_1, %c0_2] : memref<1024x128xf32, #tpu.memory_space<vmem>>, vector<1024x128xf32>
    %cst = arith.constant dense<0.000000e+00> : vector<2x128xf32>
    %2 = tpu.matmul %0, %1, %cst {dimension_numbers = #tpu.dot_dimension_numbers<[1], [0], [0], [1], [0, 0, 1, 1], [], []>} : vector<2x1024xf32>, vector<1024x128xf32>, vector<2x128xf32> -> vector<2x128xf32>
    %c0_3 = arith.constant 0 : index
    %c0_4 = arith.constant 0 : index
    %3 = vector.load %arg3[%c0_3, %c0_4] : memref<1x128xf32, #tpu.memory_space<vmem>>, vector<1x128xf32>
    %4 = vector.broadcast %3 : vector<1x128xf32> to vector<2x128xf32>
    %5 = arith.addf %2, %4 : vector<2x128xf32>
    %cst_5 = arith.constant 0.000000e+00 : f32
    %6 = vector.broadcast %cst_5 : f32 to vector<2x128xf32>
    %7 = arith.maximumf %5, %6 : vector<2x128xf32>
    %c0_6 = arith.constant 0 : index
    %c0_7 = arith.constant 0 : index
    %8 = vector.load %arg4[%c0_6, %c0_7] : memref<128x64xf32, #tpu.memory_space<vmem>>, vector<128x64xf32>
    %cst_8 = arith.constant dense<0.000000e+00> : vector<2x64xf32>
    %9 = tpu.matmul %7, %8, %cst_8 {dimension_numbers = #tpu.dot_dimension_numbers<[1], [0], [0], [1], [0, 0, 1, 1], [], []>} : vector<2x128xf32>, vector<128x64xf32>, vector<2x64xf32> -> vector<2x64xf32>
    %c0_9 = arith.constant 0 : index
    %c0_10 = arith.constant 0 : index
    %10 = vector.load %arg5[%c0_9, %c0_10] : memref<1x64xf32, #tpu.memory_space<vmem>>, vector<1x64xf32>
    %11 = vector.broadcast %10 : vector<1x64xf32> to vector<2x64xf32>
    %12 = arith.addf %9, %11 : vector<2x64xf32>
    %cst_11 = arith.constant 0.000000e+00 : f32
    %13 = vector.broadcast %cst_11 : f32 to vector<2x64xf32>
    %14 = arith.maximumf %12, %13 : vector<2x64xf32>
    %c0_12 = arith.constant 0 : index
    %c0_13 = arith.constant 0 : index
    %15 = vector.load %arg6[%c0_12, %c0_13] : memref<64x8xf32, #tpu.memory_space<vmem>>, vector<64x8xf32>
    %cst_14 = arith.constant dense<0.000000e+00> : vector<2x8xf32>
    %16 = tpu.matmul %14, %15, %cst_14 {dimension_numbers = #tpu.dot_dimension_numbers<[1], [0], [0], [1], [0, 0, 1, 1], [], []>} : vector<2x64xf32>, vector<64x8xf32>, vector<2x8xf32> -> vector<2x8xf32>
    %c0_15 = arith.constant 0 : index
    %c0_16 = arith.constant 0 : index
    %17 = vector.load %arg7[%c0_15, %c0_16] : memref<1x8xf32, #tpu.memory_space<vmem>>, vector<1x8xf32>
    %18 = vector.broadcast %17 : vector<1x8xf32> to vector<2x8xf32>
    %19 = arith.addf %16, %18 : vector<2x8xf32>
    %cst_17 = arith.constant dense<0xFF800000> : vector<2xf32>
    %20 = vector.multi_reduction <maximumf>, %19, %cst_17 [1] : vector<2x8xf32> to vector<2xf32>
    %21 = vector.shape_cast %20 : vector<2xf32> to vector<2x1xf32>
    %22 = vector.broadcast %21 : vector<2x1xf32> to vector<2x8xf32>
    %23 = arith.subf %19, %22 : vector<2x8xf32>
    %24 = math.exp %23 : vector<2x8xf32>
    %cst_18 = arith.constant dense<0.000000e+00> : vector<2xf32>
    %25 = vector.multi_reduction <add>, %24, %cst_18 [1] : vector<2x8xf32> to vector<2xf32>
    %26 = vector.shape_cast %25 : vector<2xf32> to vector<2x1xf32>
    %27 = math.log %26 : vector<2x1xf32>
    %28 = vector.broadcast %27 : vector<2x1xf32> to vector<2x8xf32>
    %29 = arith.subf %23, %28 : vector<2x8xf32>
    %c0_19 = arith.constant 0 : index
    %c0_20 = arith.constant 0 : index
    %30 = vector.load %arg8[%c0_19, %c0_20] : memref<2x8xf32, #tpu.memory_space<vmem>>, vector<2x8xf32>
    tpu.vector_store %arg8[%c0_19, %c0_20], %29 {strides = array<i32>} : memref<2x8xf32, #tpu.memory_space<vmem>>, vector<2x8xf32>,
    return
  }
  func.func @transform_0(%arg0: i32) -> (i32, i32) {
    %c0_i32 = arith.constant 0 : i32
    %c0_i32_0 = arith.constant 0 : i32
    return %arg0, %c0_i32 : i32, i32
  }
  func.func @transform_1(%arg0: i32) -> (i32, i32) {
    %c0_i32 = arith.constant 0 : i32
    %c0_i32_0 = arith.constant 0 : i32
    %c0_i32_1 = arith.constant 0 : i32
    return %c0_i32, %c0_i32_0 : i32, i32
  }
  func.func @transform_2(%arg0: i32) -> (i32, i32) {
    %c0_i32 = arith.constant 0 : i32
    %c0_i32_0 = arith.constant 0 : i32
    %c0_i32_1 = arith.constant 0 : i32
    return %c0_i32, %c0_i32_0 : i32, i32
  }
  func.func @transform_3(%arg0: i32) -> (i32, i32) {
    %c0_i32 = arith.constant 0 : i32
    %c0_i32_0 = arith.constant 0 : i32
    %c0_i32_1 = arith.constant 0 : i32
    return %c0_i32, %c0_i32_0 : i32, i32
  }
  func.func @transform_4(%arg0: i32) -> (i32, i32) {
    %c0_i32 = arith.constant 0 : i32
    %c0_i32_0 = arith.constant 0 : i32
    %c0_i32_1 = arith.constant 0 : i32
    return %c0_i32, %c0_i32_0 : i32, i32
  }
  func.func @transform_5(%arg0: i32) -> (i32, i32) {
    %c0_i32 = arith.constant 0 : i32
    %c0_i32_0 = arith.constant 0 : i32
    %c0_i32_1 = arith.constant 0 : i32
    return %c0_i32, %c0_i32_0 : i32, i32
  }
  func.func @transform_6(%arg0: i32) -> (i32, i32) {
    %c0_i32 = arith.constant 0 : i32
    %c0_i32_0 = arith.constant 0 : i32
    %c0_i32_1 = arith.constant 0 : i32
    return %c0_i32, %c0_i32_0 : i32, i32
  }
  func.func @transform_7(%arg0: i32) -> (i32, i32) {
    %c0_i32 = arith.constant 0 : i32
    %c0_i32_0 = arith.constant 0 : i32
    return %arg0, %c0_i32 : i32, i32
  }
}

</mosaic_0001>

<bundles_post_ra>
// kernel: neg.2
= control target key start
LH: loop header
LB: loop body
LE: loop exit
PB: predicated region body
PF: predicated region fallthrough
CT: control target
= control target key end

     0   :  { %s24_s0 = inlined_call_operand.vmem [shape: f32[12], index: 0, kind: input, shape index: {}]   ;;  %s25_s1 = inlined_call_operand.vmem [shape: f32[12], index: 1, kind: output, shape index: {}]  }
   0x1   :  { %v2_v0 = vld [vmem:[%s24_s0] sm:$0x1] }
   0x2   :  { %v5_v1 = vxor.u32 2147483648, %v2_v0 }
   0x4   :  { %7 = vst [vmem:[%s25_s1] sm:$0x1] %v5_v1 }

// kernel: net_forward.8
= control target key start
LH: loop header
LB: loop body
LE: loop exit
PB: predicated region body
PF: predicated region fallthrough
CT: control target
= control target key end

     0   :  { %v21_v0 = vlaneseq  ;;  %vm54_vm0 = vcmask 1043456   ;;  %vm66_vm1 = vcmask 7168   ;;  %vm68_vm2 = vcmask 3072   ;;  %s126_s1 = inlined_call_operand.vmem [shape: f32[1,512], index: 1, kind: input, shape index: {}]   ;;  %s127_s0 = inlined_call_operand.vmem [shape: f32[12,512], index: 0, kind: input, shape index: {}]   ;;  %s128_s2 = inlined_call_operand.vmem [shape: f32[12,1], index: 2, kind: output, shape index: {}]  }
   0x1   :  { %v19_v2 = vld [vmem:[%s126_s1] sm:$0xf]  ;;  %v12_v8 = vld [vmem:[%s127_s0 + $0x8] sm:$0xff]  ;;  %v13_v9 = vld [vmem:[%s127_s0 + $0x10] sm:$0xff] }
   0x2   :  { %v22_v1 = vshrl.u32 %v21_v0, 7  ;;  %v11_v3 = vld [vmem:[%s127_s0] sm:$0xff]  ;;  %v16_v15 = vld [vmem:[%s127_s0 + $0x28] sm:$0xf]  ;;  %v17_v16 = vld [vmem:[%s127_s0 + $0x30] sm:$0xf] }
   0x3   :  { %v15_v10 = vld [vmem:[%s127_s0 + $0x20] sm:$0xf]  ;;  %v18_v17 = vld [vmem:[%s127_s0 + $0x38] sm:$0xf] }
   0x4   :  { %v23_v4 = vsub.s32 0, %v22_v1  ;;  %v27_v5 = vsub.s32 1, %v22_v1  ;;  %v31_v6 = vsub.s32 2, %v22_v1  ;;  %v35_v7 = vsub.s32 3, %v22_v1  ;;  %v14_v18 = vld [vmem:[%s127_s0 + $0x18] sm:$0xff] }
   0x6   :  { %v24_v11 = vrot.slane %v19_v2, %v23_v4  ;;  %v28_v12 = vrot.slane %v19_v2, %v27_v5  ;;  %v32_v13 = vrot.slane %v19_v2, %v31_v6  ;;  %v36_v14 = vrot.slane %v19_v2, %v35_v7 }
   0x8   :  { %v41_v19 = vmul.f32 %v24_v11, %v11_v3  ;;  %v42_v20 = vmul.f32 %v28_v12, %v12_v8  ;;  %v43_v21 = vmul.f32 %v32_v13, %v13_v9  ;;  %v45_v22 = vmul.f32 %v24_v11, %v15_v10 }
   0x9   :  { %v46_v23 = vmul.f32 %v28_v12, %v16_v15  ;;  %v47_v24 = vmul.f32 %v32_v13, %v17_v16  ;;  %v48_v25 = vmul.f32 %v36_v14, %v18_v17  ;;  %v44_v26 = vmul.f32 %v36_v14, %v14_v18 }
   0xa   :  { %v49_v27 = vadd.f32 %v42_v20, %v41_v19  ;;  %v55_v28 = vsel %vm54_vm0, %v45_v22, 0.0 }
   0xb   :  { %v56_v29 = vsel %vm54_vm0, %v46_v23, 0.0  ;;  %v58_v30 = vsel %vm54_vm0, %v47_v24, 0.0  ;;  %v60_v33 = vsel %vm54_vm0, %v48_v25, 0.0 }
   0xc   :  { %v50_v31 = vadd.f32 %v49_v27, %v43_v21  ;;  %v57_v32 = vadd.f32 %v56_v29, %v55_v28 }
   0xe   :  { %v51_v34 = vadd.f32 %v50_v31, %v44_v26  ;;  %v59_v35 = vadd.f32 %v58_v30, %v57_v32 }
  0x10   :  { %52 = vadd.xlane.f32.xlu0 %v51_v34  ;;  %v61_v36 = vadd.f32 %v60_v33, %v59_v35 }
  0x14   :  { %62 = vadd.xlane.f32.xlu0 %v61_v36 }
  0x99   :  { %v53_v37 = vpop.xlane.xlu0 %52 }
  0x9a   :  { %74 = vtanh.f32 %v53_v37 }
  0x9d   :  { %v63_v38 = vpop.xlane.xlu0 %62 }
  0x9e   :  { %76 = vtanh.f32 %v63_v38 }
  0xa7   :  { %v75_v39 = vpop.eup %74 }
  0xa8   :  { %67 = vst.msk [vmem:[%s128_s2] sm:$0xff] %vm66_vm1, %v75_v39 }
  0xab   :  { %v77_v40 = vpop.eup %76 }
  0xac   :  { %69 = vst.msk [vmem:[%s128_s2 + $0x8] sm:$0xf] %vm68_vm2, %v77_v40 }

// kernel: net_forward.6
= control target key start
LH: loop header
LB: loop body
LE: loop exit
PB: predicated region body
PF: predicated region fallthrough
CT: control target
= control target key end

     0   :  { %vm189_vm0 = vcmask 523264   ;;  %vm247_vm1 = vcmask 261120   ;;  %s421_s1 = inlined_call_operand.vmem [shape: bf16[128,64], index: 1, kind: input, shape index: {}]   ;;  %s422_s0 = inlined_call_operand.vmem [shape: f32[24,128], index: 0, kind: input, shape index: {}]   ;;  %s423_s3 = inlined_call_operand.vmem [shape: bf16[64,32], index: 3, kind: input, shape index: {}]   ;;  %s424_s2 = inlined_call_operand.vmem [shape: f32[1,64], index: 2, kind: input, shape index: {}]   ;;  %s425_s4 = inlined_call_operand.vmem [shape: f32[1,32], index: 4, kind: input, shape index: {}]   ;;  %s426_s5 = inlined_call_operand.vmem [shape: f32[24,32], index: 5, kind: output, shape index: {}]  }
   0x1   :  { %v319_v0 = vld [vmem:[%s421_s1 + $0x38] sm:$0xff]   ;;  %v320_v1 = vld [vmem:[%s421_s1 + $0x30] sm:$0xff]   ;;  %v321_v2 = vld [vmem:[%s421_s1 + $0x28] sm:$0xff]  }
   0x2   :  { %287 = vmatprep.subr.bf16.mxu0 %v319_v0  ;;  %v322_v3 = vld [vmem:[%s421_s1 + $0x20] sm:$0xff]   ;;  %v22_v5 = vld [vmem:[%s422_s0 + $0x8] sm:$0xff]  ;;  %v327_v7 = vld [vmem:[%s423_s3 + $0x18] sm:$0xff]  }
   0x3   :  { %288 = vmatpush3.bf16.msra.mxu0 %v319_v0  ;;  %v21_v4 = vld [vmem:[%s422_s0] sm:$0xff]  ;;  %v323_v8 = vld [vmem:[%s421_s1 + $0x18] sm:$0xff]   ;;  %307 = vmatprep.subr.bf16.mxu1 %v327_v7  ;;  %v324_v9 = vld [vmem:[%s421_s1 + $0x10] sm:$0xff]  }
   0x4   :  { %289 = vmatprep.subr.bf16.mxu0 %v320_v1  ;;  %v24_v6 = vpack.c.bf16 %v22_v5, %v21_v4  ;;  %308 = vmatpush3.bf16.msra.mxu1 %v327_v7  ;;  %v325_v10 = vld [vmem:[%s421_s1 + $0x8] sm:$0xff]   ;;  %v326_v11 = vld [vmem:[%s421_s1] sm:$0xff]   ;;  %v23_v12 = vld [vmem:[%s422_s0 + $0x10] sm:$0xff] }
   0x5   :  { %v25_v13 = vpack.c.bf16 %v23_v12, %v23_v12  ;;  %v328_v14 = vld [vmem:[%s423_s3 + $0x10] sm:$0xff]   ;;  %v329_v15 = vld [vmem:[%s423_s3 + $0x8] sm:$0xff]   ;;  %v330_v16 = vld [vmem:[%s423_s3] sm:$0xff]  }
   0x6   :  { %303 = vmatprep.mubr.bf16.mxu0 %v24_v6  ;;  %309 = vmatprep.subr.bf16.mxu1 %v328_v14  ;;  %v255_v18 = vld [vmem:[%s424_s2] ss:$0 sm:$0xff] }
   0x7   :  { %290 = vmatpush3.bf16.msra.mxu0 %v320_v1  ;;  %v264_v30 = vld [vmem:[%s425_s4] ss:$0 sm:$0xff] }
   0x8   :  { %291 = vmatprep.subr.bf16.mxu0 %v321_v2  ;;  %310 = vmatpush3.bf16.msra.mxu1 %v328_v14 }
   0x9   :  { %311 = vmatprep.subr.bf16.mxu1 %v329_v15 }
   0xb   :  { %292 = vmatpush3.bf16.msra.mxu0 %v321_v2 }
   0xc   :  { %293 = vmatprep.subr.bf16.mxu0 %v322_v3  ;;  %312 = vmatpush3.bf16.msra.mxu1 %v329_v15 }
   0xd   :  { %313 = vmatprep.subr.bf16.mxu1 %v330_v16 }
   0xf   :  { %294 = vmatpush3.bf16.msra.mxu0 %v322_v3 }
  0x10   :  { %295 = vmatprep.subr.bf16.mxu0 %v323_v8  ;;  %314 = vmatpush3.bf16.msra.mxu1 %v330_v16 }
  0x13   :  { %296 = vmatpush3.bf16.msra.mxu0 %v323_v8 }
  0x14   :  { %297 = vmatprep.subr.bf16.mxu0 %v324_v9 }
  0x17   :  { %298 = vmatpush3.bf16.msra.mxu0 %v324_v9 }
  0x18   :  { %299 = vmatprep.subr.bf16.mxu0 %v325_v10 }
  0x1b   :  { %300 = vmatpush3.bf16.msra.mxu0 %v325_v10 }
  0x1c   :  { %301 = vmatprep.subr.bf16.mxu0 %v326_v11 }
  0x1f   :  { %302 = vmatpush3.bf16.msra.mxu0 %v326_v11 }
  0x22   :  { %304 = vmatmul.mubr.bf16.vlgmr.msra.gmra.mxu0 %v25_v13 }
  0xe2   :  { %v305_v17 = vpop.f32.mrf.mxu0 }
  0xe3   :  { %v140_v20 = vadd.f32 %v305_v17, %v255_v18 }
  0xe4   :  { %v131_v19 = vpop.f32.mrf.mxu0 }
  0xe5   :  { %v132_v22 = vadd.f32 %v255_v18, %v131_v19  ;;  %v147_v25 = vmax.f32 %v140_v20, 0.0 }
  0xe6   :  { %v306_v21 = vpop.f32.mrf.mxu0 }
  0xe7   :  { %v145_v26 = vmax.f32 %v132_v22, 0.0  ;;  %v149_v29 = vpack.c.bf16 %v147_v25, %v147_v25 }
  0xe8   :  { %v134_v23 = vpop.f32.mrf.mxu0 }
  0xe9   :  { %v135_v24 = vadd.f32 %v255_v18, %v134_v23 }
  0xeb   :  { %v146_v27 = vmax.f32 %v135_v24, 0.0 }
  0xed   :  { %v148_v28 = vpack.c.bf16 %v146_v27, %v145_v26 }
  0xef   :  { %315 = vmatprep.mubr.msk.bf16.mxu1 %vm189_vm0, %v148_v28 }
  0xf0   :  { %316 = vmatmul.mubr.msk.bf16.vlgmr.msra.gmra.mxu1 %vm189_vm0, %v149_v29 }
 0x1b0   :  { %v317_v31 = vpop.f32.mrf.mxu1 }
 0x1b1   :  { %v239_v32 = vadd.f32 %v317_v31, %v264_v30 }
 0x1b2   :  { %v230_v33 = vpop.f32.mrf.mxu1 }
 0x1b3   :  { %v246_v34 = vmax.f32 %v239_v32, 0.0  ;;  %v231_v35 = vadd.f32 %v264_v30, %v230_v33 }
 0x1b4   :  { %v318_v36 = vpop.f32.mrf.mxu1 }
 0x1b5   :  { %250 = vst.msk [vmem:[%s426_s5 + $0x10] sm:$0xff] %vm247_vm1, %v246_v34  ;;  %v244_v37 = vmax.f32 %v231_v35, 0.0 }
 0x1b6   :  { %v233_v38 = vpop.f32.mrf.mxu1 }
 0x1b7   :  { %248 = vst.msk [vmem:[%s426_s5] sm:$0xff] %vm247_vm1, %v244_v37  ;;  %v234_v39 = vadd.f32 %v264_v30, %v233_v38 }
 0x1b9   :  { %v245_v40 = vmax.f32 %v234_v39, 0.0 }
 0x1bb   :  { %249 = vst.msk [vmem:[%s426_s5 + $0x8] sm:$0xff] %vm247_vm1, %v245_v40 }

// kernel: net_forward.7
= control target key start
LH: loop header
LB: loop body
LE: loop exit
PB: predicated region body
PF: predicated region fallthrough
CT: control target
= control target key end

     0   :  { %v522_v0 = vmov 0.0   ;;  %vm523_vm0 = vmmov 0   ;;  %vm54_vm1 = vcmask 261120   ;;  %v524_v42 = vmov 0   ;;  %s704_s2 = inlined_call_operand.vmem [shape: bf16[32,128], index: 2, kind: input, shape index: {}]   ;;  %s705_s0 = inlined_call_operand.vmem [shape: f32[12,32], index: 0, kind: input, shape index: {}]   ;;  %s706_s1 = inlined_call_operand.vmem [shape: f32[12,32], index: 1, kind: input, shape index: {}]   ;;  %s707_s4 = inlined_call_operand.vmem [shape: bf16[128,512], index: 4, kind: input, shape index: {}]   ;;  %s708_s3 = inlined_call_operand.vmem [shape: f32[1,128], index: 3, kind: input, shape index: {}]   ;;  %s709_s5 = inlined_call_operand.vmem [shape: f32[1,512], index: 5, kind: input, shape index: {}]   ;;  %s710_s6 = inlined_call_operand.vmem [shape: f32[12,512], index: 6, kind: output, shape index: {}]  }
   0x1   :  { %461 = vmatprep.subr.bf16.mxu0 %v522_v0  ;;  %v472_v1 = vld [vmem:[%s704_s2 + $0x8] sm:$0xff]   ;;  %465 = vmatprep.mubr.msk.bf16.mxu0 %vm523_vm0, %v522_v0  ;;  %v473_v2 = vld [vmem:[%s704_s2] sm:$0xff]   ;;  %v136_v53 = vlaneseq }
   0x2   :  { %462 = vmatpush3.bf16.msra.mxu0 %v472_v1  ;;  %v24_v3 = vld [vmem:[%s705_s0] sm:$0xff]  ;;  %v25_v4 = vld [vmem:[%s705_s0 + $0x8] sm:$0xf]  ;;  %v478_v11 = vld [vmem:[%s707_s4 + $0xec] ss:$16 sps:$4 sm:$0xff]   ;;  %348 = vmatprep.mubr.bf16.mxu1 %v524_v42 }
   0x3   :  { %v26_v5 = vld [vmem:[%s706_s1] sm:$0xff]  ;;  %463 = vmatprep.subr.bf16.mxu0 %v522_v0  ;;  %v27_v6 = vld [vmem:[%s706_s1 + $0x8] sm:$0xf]  ;;  %v484_v15 = vld [vmem:[%s707_s4 + $0xcc] ss:$16 sps:$4 sm:$0xff]   ;;  %v137_v54 = vshrl.u32 %v136_v53, 7 }
   0x4   :  { %v28_v7 = vadd.f32 %v26_v5, %v24_v3  ;;  %v29_v8 = vadd.f32 %v27_v6, %v25_v4  ;;  %v474_v9 = vld [vmem:[%s707_s4 + $0xe4] ss:$16 sps:$4 sm:$0xff]   ;;  %v476_v10 = vld [vmem:[%s707_s4 + $0xe8] ss:$16 sps:$4 sm:$0xff]   ;;  %v479_v12 = vld [vmem:[%s707_s4 + $0xe0] ss:$16 sps:$4 sm:$0xff]  }
   0x5   :  { %316 = vmatprep.subr.bf16.mxu1 %v474_v9  ;;  %v480_v14 = vld [vmem:[%s707_s4 + $0xc4] ss:$16 sps:$4 sm:$0xff]   ;;  %v485_v16 = vld [vmem:[%s707_s4 + $0xc0] ss:$16 sps:$4 sm:$0xff]   ;;  %v482_v18 = vld [vmem:[%s707_s4 + $0xc8] ss:$16 sps:$4 sm:$0xff]  }
   0x6   :  { %464 = vmatpush3.bf16.msra.mxu0 %v473_v2  ;;  %v30_v13 = vpack.c.bf16 %v29_v8, %v28_v7  ;;  %317 = vmatpush1.bf16.msra.mxu1 %v479_v12  ;;  %v486_v17 = vld [vmem:[%s707_s4 + $0xa4] ss:$16 sps:$4 sm:$0xff]   ;;  %v490_v19 = vld [vmem:[%s707_s4 + $0xac] ss:$16 sps:$4 sm:$0xff]   ;;  %v491_v20 = vld [vmem:[%s707_s4 + $0xa0] ss:$16 sps:$4 sm:$0xff]  }
   0x7   :  { %359 = vmatprep.subr.bf16.mxu0 %v478_v11  ;;  %318 = vmatprep.subr.bf16.mxu1 %v480_v14  ;;  %v492_v21 = vld [vmem:[%s707_s4 + $0x84] ss:$16 sps:$4 sm:$0xff]   ;;  %v488_v22 = vld [vmem:[%s707_s4 + $0xa8] ss:$16 sps:$4 sm:$0xff]   ;;  %v496_v23 = vld [vmem:[%s707_s4 + $0x8c] ss:$16 sps:$4 sm:$0xff]  }
   0x8   :  { %v497_v24 = vld [vmem:[%s707_s4 + $0x80] ss:$16 sps:$4 sm:$0xff]   ;;  %v498_v25 = vld [vmem:[%s707_s4 + $0x64] ss:$16 sps:$4 sm:$0xff]   ;;  %v494_v26 = vld [vmem:[%s707_s4 + $0x88] ss:$16 sps:$4 sm:$0xff]  }
   0x9   :  { %466 = vmatmul.mubr.msk.bf16.vlgmr.msra.gmra.mxu0 %vm54_vm1, %v30_v13  ;;  %v502_v27 = vld [vmem:[%s707_s4 + $0x6c] ss:$16 sps:$4 sm:$0xff]   ;;  %v503_v28 = vld [vmem:[%s707_s4 + $0x60] ss:$16 sps:$4 sm:$0xff]   ;;  %v504_v29 = vld [vmem:[%s707_s4 + $0x44] ss:$16 sps:$4 sm:$0xff]  }
   0xa   :  { %360 = vmatpush1.bf16.msra.mxu0 %v476_v10  ;;  %319 = vmatpush1.bf16.msra.mxu1 %v485_v16  ;;  %v500_v30 = vld [vmem:[%s707_s4 + $0x68] ss:$16 sps:$4 sm:$0xff]   ;;  %v508_v31 = vld [vmem:[%s707_s4 + $0x4c] ss:$16 sps:$4 sm:$0xff]   ;;  %v509_v33 = vld [vmem:[%s707_s4 + $0x40] ss:$16 sps:$4 sm:$0xff]  }
   0xb   :  { %361 = vmatprep.subr.bf16.mxu0 %v484_v15  ;;  %320 = vmatprep.subr.bf16.mxu1 %v486_v17  ;;  %v506_v32 = vld [vmem:[%s707_s4 + $0x48] ss:$16 sps:$4 sm:$0xff]   ;;  %v510_v34 = vld [vmem:[%s707_s4 + $0x24] ss:$16 sps:$4 sm:$0xff]   ;;  %v514_v35 = vld [vmem:[%s707_s4 + $0x2c] ss:$16 sps:$4 sm:$0xff]  }
   0xc   :  { %v512_v36 = vld [vmem:[%s707_s4 + $0x28] ss:$16 sps:$4 sm:$0xff]   ;;  %v515_v37 = vld [vmem:[%s707_s4 + $0x20] ss:$16 sps:$4 sm:$0xff]   ;;  %v516_v38 = vld [vmem:[%s707_s4 + $0x4] ss:$16 sps:$4 sm:$0xff]   ;;  %391 = vmatprep.mubr.bf16.mxu0 %v524_v42 }
   0xd   :  { %v520_v39 = vld [vmem:[%s707_s4 + $0xc] ss:$16 sps:$4 sm:$0xff]   ;;  %v518_v40 = vld [vmem:[%s707_s4 + $0x8] ss:$16 sps:$4 sm:$0xff]   ;;  %v521_v41 = vld [vmem:[%s707_s4] ss:$16 sps:$4 sm:$0xff]  }
   0xe   :  { %362 = vmatpush1.bf16.msra.mxu0 %v482_v18  ;;  %321 = vmatpush1.bf16.msra.mxu1 %v491_v20  ;;  %v422_v43 = vld [vmem:[%s708_s3] ss:$0 sm:$0xff]  ;;  %v138_v55 = vsub.s32 0, %v137_v54  ;;  %v146_v56 = vsub.s32 2, %v137_v54  ;;  %v142_v58 = vsub.s32 1, %v137_v54  ;;  %v150_v59 = vsub.s32 3, %v137_v54 }
   0xf   :  { %363 = vmatprep.subr.bf16.mxu0 %v490_v19  ;;  %322 = vmatprep.subr.bf16.mxu1 %v492_v21  ;;  %v134_v57 = vld [vmem:[%s709_s5] sm:$0xf] }
  0x10   :  { %v139_v60 = vrot.slane %v134_v57, %v138_v55  ;;  %v147_v61 = vrot.slane %v134_v57, %v146_v56  ;;  %v143_v62 = vrot.slane %v134_v57, %v142_v58  ;;  %v151_v63 = vrot.slane %v134_v57, %v150_v59 }
  0x12   :  { %364 = vmatpush1.bf16.msra.mxu0 %v488_v22  ;;  %323 = vmatpush1.bf16.msra.mxu1 %v497_v24 }
  0x13   :  { %365 = vmatprep.subr.bf16.mxu0 %v496_v23  ;;  %324 = vmatprep.subr.bf16.mxu1 %v498_v25 }
  0x16   :  { %366 = vmatpush1.bf16.msra.mxu0 %v494_v26  ;;  %325 = vmatpush1.bf16.msra.mxu1 %v503_v28 }
  0x17   :  { %367 = vmatprep.subr.bf16.mxu0 %v502_v27  ;;  %326 = vmatprep.subr.bf16.mxu1 %v504_v29 }
  0x1a   :  { %368 = vmatpush1.bf16.msra.mxu0 %v500_v30  ;;  %327 = vmatpush1.bf16.msra.mxu1 %v509_v33 }
  0x1b   :  { %369 = vmatprep.subr.bf16.mxu0 %v508_v31  ;;  %328 = vmatprep.subr.bf16.mxu1 %v510_v34 }
  0x1e   :  { %370 = vmatpush1.bf16.msra.mxu0 %v506_v32  ;;  %329 = vmatpush1.bf16.msra.mxu1 %v515_v37 }
  0x1f   :  { %371 = vmatprep.subr.bf16.mxu0 %v514_v35  ;;  %330 = vmatprep.subr.bf16.mxu1 %v516_v38 }
  0x22   :  { %372 = vmatpush1.bf16.msra.mxu0 %v512_v36  ;;  %331 = vmatpush1.bf16.msra.mxu1 %v521_v41 }
  0x23   :  { %373 = vmatprep.subr.bf16.mxu0 %v520_v39 }
  0x26   :  { %374 = vmatpush1.bf16.msra.mxu0 %v518_v40 }
  0xc9   :  { %v92_v44 = vpop.f32.mrf.mxu0 }
  0xca   :  { %v93_v46 = vadd.f32 %v422_v43, %v92_v44 }
  0xcb   :  { %v467_v45 = vpop.f32.mrf.mxu0 }
  0xcc   :  { %v99_v50 = vmax.f32 %v93_v46, 0.0 }
  0xcd   :  { %v95_v47 = vpop.f32.mrf.mxu0 }
  0xce   :  { %v96_v48 = vadd.f32 %v422_v43, %v95_v47 }
  0xcf   :  { %v468_v49 = vpop.f32.mrf.mxu0 }
  0xd0   :  { %v100_v51 = vmax.f32 %v96_v48, 0.0 }
  0xd2   :  { %v101_v52 = vpack.c.bf16 %v100_v51, %v99_v50 }
  0xd4   :  { %349 = vmatmul.mubr.bf16.vlgmr.msra.gmra.mxu1 %v101_v52  ;;  %392 = vmatmul.mubr.bf16.vlgmr.msra.gmra.mxu0 %v101_v52 }
 0x194   :  { %v350_v0 = vpop.f32.mrf.mxu1  ;;  %v393_v1 = vpop.f32.mrf.mxu0 }
 0x195   :  { %v351_v2 = vadd.f32 %v350_v0, %v139_v60  ;;  %v394_v3 = vadd.f32 %v393_v1, %v147_v61 }
 0x196   :  { %v352_v4 = vpop.f32.mrf.mxu1  ;;  %v395_v5 = vpop.f32.mrf.mxu0 }
 0x197   :  { %v402_v6 = vmax.f32 %v351_v2, 0.0  ;;  %v404_v7 = vmax.f32 %v394_v3, 0.0  ;;  %v353_v8 = vadd.f32 %v352_v4, %v143_v62  ;;  %v396_v9 = vadd.f32 %v395_v5, %v151_v63 }
 0x198   :  { %v354_v10 = vpop.f32.mrf.mxu1  ;;  %v397_v11 = vpop.f32.mrf.mxu0 }
 0x199   :  { %410 = vst [vmem:[%s710_s6] sm:$0xff] %v402_v6  ;;  %412 = vst [vmem:[%s710_s6 + $0x10] sm:$0xff] %v404_v7  ;;  %v403_v12 = vmax.f32 %v353_v8, 0.0  ;;  %v405_v13 = vmax.f32 %v396_v9, 0.0  ;;  %v355_v14 = vadd.f32 %v354_v10, %v139_v60  ;;  %v398_v15 = vadd.f32 %v397_v11, %v147_v61 }
 0x19a   :  { %v356_v16 = vpop.f32.mrf.mxu1  ;;  %v399_v17 = vpop.f32.mrf.mxu0 }
 0x19b   :  { %411 = vst [vmem:[%s710_s6 + $0x8] sm:$0xff] %v403_v12  ;;  %413 = vst [vmem:[%s710_s6 + $0x18] sm:$0xff] %v405_v13  ;;  %v406_v18 = vmax.f32 %v355_v14, 0.0  ;;  %v408_v19 = vmax.f32 %v398_v15, 0.0  ;;  %v357_v20 = vadd.f32 %v356_v16, %v143_v62  ;;  %v400_v21 = vadd.f32 %v399_v17, %v151_v63 }
 0x19d   :  { %414 = vst [vmem:[%s710_s6 + $0x20] sm:$0xf] %v406_v18  ;;  %416 = vst [vmem:[%s710_s6 + $0x30] sm:$0xf] %v408_v19  ;;  %v407_v22 = vmax.f32 %v357_v20, 0.0  ;;  %v409_v23 = vmax.f32 %v400_v21, 0.0 }
 0x19f   :  { %415 = vst [vmem:[%s710_s6 + $0x28] sm:$0xf] %v407_v22  ;;  %417 = vst [vmem:[%s710_s6 + $0x38] sm:$0xf] %v409_v23 }

// kernel: net_forward.9
= control target key start
LH: loop header
LB: loop body
LE: loop exit
PB: predicated region body
PF: predicated region fallthrough
CT: control target
= control target key end

     0   :  { %s2313_s1 = inlined_call_operand.vmem [shape: bf16[512,640], index: 1, kind: input, shape index: {}]   ;;  %s2314_s0 = inlined_call_operand.vmem [shape: f32[12,512], index: 0, kind: input, shape index: {}]   ;;  %s2315_s2 = inlined_call_operand.vmem [shape: f32[12,640], index: 2, kind: output, shape index: {}]  }
   0x1   :  { %v1520_v0 = vld [vmem:[%s2313_s1 + $0x11c] ss:$20 sps:$4 sm:$0xff]   ;;  %v1524_v2 = vld [vmem:[%s2313_s1 + $0x118] ss:$20 sps:$4 sm:$0xff]   ;;  %v1526_v4 = vld [vmem:[%s2313_s1 + $0xf4] ss:$20 sps:$4 sm:$0xff]  }
   0x2   :  { %v1522_v1 = vld [vmem:[%s2313_s1 + $0x39c] ss:$20 sps:$4 sm:$0xff]   ;;  %1048 = vmatprep.subr.bf16.mxu0 %v1520_v0  ;;  %v1525_v3 = vld [vmem:[%s2313_s1 + $0x398] ss:$20 sps:$4 sm:$0xff]   ;;  %v1528_v5 = vld [vmem:[%s2313_s1 + $0x374] ss:$20 sps:$4 sm:$0xff]  }
   0x3   :  { %1091 = vmatprep.subr.bf16.mxu1 %v1522_v1  ;;  %1049 = vmatpush1.bf16.msra.mxu0 %v1524_v2  ;;  %v1530_v6 = vld [vmem:[%s2313_s1 + $0xf0] ss:$20 sps:$4 sm:$0xff]   ;;  %v1532_v8 = vld [vmem:[%s2313_s1 + $0xcc] ss:$20 sps:$4 sm:$0xff]   ;;  %v1536_v10 = vld [vmem:[%s2313_s1 + $0xc8] ss:$20 sps:$4 sm:$0xff]  }
   0x4   :  { %1092 = vmatpush1.bf16.msra.mxu1 %v1525_v3  ;;  %1050 = vmatprep.subr.bf16.mxu0 %v1526_v4  ;;  %v1531_v7 = vld [vmem:[%s2313_s1 + $0x370] ss:$20 sps:$4 sm:$0xff]   ;;  %v1534_v9 = vld [vmem:[%s2313_s1 + $0x34c] ss:$20 sps:$4 sm:$0xff]   ;;  %v1537_v11 = vld [vmem:[%s2313_s1 + $0x348] ss:$20 sps:$4 sm:$0xff]  }
   0x5   :  { %1093 = vmatprep.subr.bf16.mxu1 %v1528_v5  ;;  %v1538_v12 = vld [vmem:[%s2313_s1 + $0xa4] ss:$20 sps:$4 sm:$0xff]   ;;  %v1542_v14 = vld [vmem:[%s2313_s1 + $0xa0] ss:$20 sps:$4 sm:$0xff]   ;;  %v1544_v16 = vld [vmem:[%s2313_s1 + $0x7c] ss:$20 sps:$4 sm:$0xff]  }
   0x6   :  { %v1540_v13 = vld [vmem:[%s2313_s1 + $0x324] ss:$20 sps:$4 sm:$0xff]   ;;  %v1543_v15 = vld [vmem:[%s2313_s1 + $0x320] ss:$20 sps:$4 sm:$0xff]   ;;  %v1546_v17 = vld [vmem:[%s2313_s1 + $0x2fc] ss:$20 sps:$4 sm:$0xff]  }
   0x7   :  { %1051 = vmatpush1.bf16.msra.mxu0 %v1530_v6  ;;  %v1548_v18 = vld [vmem:[%s2313_s1 + $0x78] ss:$20 sps:$4 sm:$0xff]   ;;  %v1550_v20 = vld [vmem:[%s2313_s1 + $0x54] ss:$20 sps:$4 sm:$0xff]   ;;  %v1554_v22 = vld [vmem:[%s2313_s1 + $0x50] ss:$20 sps:$4 sm:$0xff]  }
   0x8   :  { %1094 = vmatpush1.bf16.msra.mxu1 %v1531_v7  ;;  %1052 = vmatprep.subr.bf16.mxu0 %v1532_v8  ;;  %v1549_v19 = vld [vmem:[%s2313_s1 + $0x2f8] ss:$20 sps:$4 sm:$0xff]   ;;  %v1552_v21 = vld [vmem:[%s2313_s1 + $0x2d4] ss:$20 sps:$4 sm:$0xff]   ;;  %v1555_v23 = vld [vmem:[%s2313_s1 + $0x2d0] ss:$20 sps:$4 sm:$0xff]  }
   0x9   :  { %1095 = vmatprep.subr.bf16.mxu1 %v1534_v9  ;;  %v1556_v24 = vld [vmem:[%s2313_s1 + $0x2c] ss:$20 sps:$4 sm:$0xff]   ;;  %v1560_v26 = vld [vmem:[%s2313_s1 + $0x28] ss:$20 sps:$4 sm:$0xff]   ;;  %v1562_v28 = vld [vmem:[%s2313_s1 + $0x4] ss:$20 sps:$4 sm:$0xff]  }
   0xa   :  { %v1558_v25 = vld [vmem:[%s2313_s1 + $0x2ac] ss:$20 sps:$4 sm:$0xff]   ;;  %v1561_v27 = vld [vmem:[%s2313_s1 + $0x2a8] ss:$20 sps:$4 sm:$0xff]   ;;  %v1564_v29 = vld [vmem:[%s2313_s1 + $0x284] ss:$20 sps:$4 sm:$0xff]  }
   0xb   :  { %1053 = vmatpush1.bf16.msra.mxu0 %v1536_v10  ;;  %v1566_v30 = vld [vmem:[%s2313_s1] ss:$20 sps:$4 sm:$0xff]   ;;  %v1568_v32 = vld [vmem:[%s2313_s1 + $0x25c] ss:$20 sps:$4 sm:$0xff]   ;;  %v1572_v34 = vld [vmem:[%s2313_s1 + $0x258] ss:$20 sps:$4 sm:$0xff]  }
   0xc   :  { %1096 = vmatpush1.bf16.msra.mxu1 %v1537_v11  ;;  %1054 = vmatprep.subr.bf16.mxu0 %v1538_v12  ;;  %v1567_v31 = vld [vmem:[%s2313_s1 + $0x280] ss:$20 sps:$4 sm:$0xff]   ;;  %v1570_v33 = vld [vmem:[%s2313_s1 + $0x4dc] ss:$20 sps:$4 sm:$0xff]   ;;  %v1573_v35 = vld [vmem:[%s2313_s1 + $0x4d8] ss:$20 sps:$4 sm:$0xff]  }
   0xd   :  { %1097 = vmatprep.subr.bf16.mxu1 %v1540_v13  ;;  %v1574_v36 = vld [vmem:[%s2313_s1 + $0x234] ss:$20 sps:$4 sm:$0xff]   ;;  %v1578_v38 = vld [vmem:[%s2313_s1 + $0x230] ss:$20 sps:$4 sm:$0xff]   ;;  %v1580_v40 = vld [vmem:[%s2313_s1 + $0x20c] ss:$20 sps:$4 sm:$0xff]  }
   0xe   :  { %v1576_v37 = vld [vmem:[%s2313_s1 + $0x4b4] ss:$20 sps:$4 sm:$0xff]   ;;  %v1579_v39 = vld [vmem:[%s2313_s1 + $0x4b0] ss:$20 sps:$4 sm:$0xff]   ;;  %v1582_v41 = vld [vmem:[%s2313_s1 + $0x48c] ss:$20 sps:$4 sm:$0xff]  }
   0xf   :  { %1055 = vmatpush1.bf16.msra.mxu0 %v1542_v14  ;;  %v1584_v42 = vld [vmem:[%s2313_s1 + $0x208] ss:$20 sps:$4 sm:$0xff]   ;;  %v1586_v44 = vld [vmem:[%s2313_s1 + $0x1e4] ss:$20 sps:$4 sm:$0xff]   ;;  %v1590_v50 = vld [vmem:[%s2313_s1 + $0x1e0] ss:$20 sps:$4 sm:$0xff]  }
  0x10   :  { %1098 = vmatpush1.bf16.msra.mxu1 %v1543_v15  ;;  %1056 = vmatprep.subr.bf16.mxu0 %v1544_v16  ;;  %v1585_v43 = vld [vmem:[%s2313_s1 + $0x488] ss:$20 sps:$4 sm:$0xff]   ;;  %v1588_v45 = vld [vmem:[%s2313_s1 + $0x464] ss:$20 sps:$4 sm:$0xff]   ;;  %v1591_v51 = vld [vmem:[%s2313_s1 + $0x460] ss:$20 sps:$4 sm:$0xff]  }
  0x11   :  { %1099 = vmatprep.subr.bf16.mxu1 %v1546_v17  ;;  %v13_v46 = vld [vmem:[%s2314_s0 + $0x8] sm:$0xff]  ;;  %v15_v48 = vld [vmem:[%s2314_s0 + $0x18] sm:$0xff]  ;;  %v1602_v60 = vld [vmem:[%s2313_s1 + $0x190] ss:$20 sps:$4 sm:$0xff]  }
  0x12   :  { %v17_v47 = vld [vmem:[%s2314_s0 + $0x28] sm:$0xf]  ;;  %v19_v49 = vld [vmem:[%s2314_s0 + $0x38] sm:$0xf]  ;;  %v1592_v52 = vld [vmem:[%s2313_s1 + $0x1bc] ss:$20 sps:$4 sm:$0xff]  }
  0x13   :  { %1057 = vmatpush1.bf16.msra.mxu0 %v1548_v18  ;;  %v1918_v53 = vpack.c.bf16 %v17_v47, %v13_v46  ;;  %v1920_v54 = vpack.c.bf16 %v19_v49, %v15_v48  ;;  %v1594_v55 = vld [vmem:[%s2313_s1 + $0x43c] ss:$20 sps:$4 sm:$0xff]   ;;  %v1596_v56 = vld [vmem:[%s2313_s1 + $0x1b8] ss:$20 sps:$4 sm:$0xff]   ;;  %v1598_v58 = vld [vmem:[%s2313_s1 + $0x194] ss:$20 sps:$4 sm:$0xff]  }
  0x14   :  { %1100 = vmatpush1.bf16.msra.mxu1 %v1549_v19  ;;  %1058 = vmatprep.subr.bf16.mxu0 %v1550_v20  ;;  %v1597_v57 = vld [vmem:[%s2313_s1 + $0x438] ss:$20 sps:$4 sm:$0xff]   ;;  %v1600_v59 = vld [vmem:[%s2313_s1 + $0x414] ss:$20 sps:$4 sm:$0xff]   ;;  %v1603_v61 = vld [vmem:[%s2313_s1 + $0x410] ss:$20 sps:$4 sm:$0xff]  }
  0x15   :  { %1101 = vmatprep.subr.bf16.mxu1 %v1552_v21  ;;  %1080 = vmatprep.mubr.bf16.mxu0 %v1918_v53  ;;  %v1604_v62 = vld [vmem:[%s2313_s1 + $0x16c] ss:$20 sps:$4 sm:$0xff]   ;;  %v1608_v0 = vld [vmem:[%s2313_s1 + $0x168] ss:$20 sps:$4 sm:$0xff]   ;;  %v1610_v2 = vld [vmem:[%s2313_s1 + $0x144] ss:$20 sps:$4 sm:$0xff]  }
  0x16   :  { %1123 = vmatprep.mubr.bf16.mxu1 %v1920_v54  ;;  %v1606_v63 = vld [vmem:[%s2313_s1 + $0x3ec] ss:$20 sps:$4 sm:$0xff]   ;;  %v1609_v1 = vld [vmem:[%s2313_s1 + $0x3e8] ss:$20 sps:$4 sm:$0xff]   ;;  %v1612_v3 = vld [vmem:[%s2313_s1 + $0x3c4] ss:$20 sps:$4 sm:$0xff]  }
  0x17   :  { %1059 = vmatpush1.bf16.msra.mxu0 %v1554_v22  ;;  %v1614_v4 = vld [vmem:[%s2313_s1 + $0x140] ss:$20 sps:$4 sm:$0xff]   ;;  %v18_v9 = vld [vmem:[%s2314_s0 + $0x30] sm:$0xf]  ;;  %v1618_v10 = vld [vmem:[%s2313_s1 + $0x124] ss:$20 sps:$4 sm:$0xff]  }
  0x18   :  { %1102 = vmatpush1.bf16.msra.mxu1 %v1555_v23  ;;  %1060 = vmatprep.subr.bf16.mxu0 %v1556_v24  ;;  %v1615_v5 = vld [vmem:[%s2313_s1 + $0x3c0] ss:$20 sps:$4 sm:$0xff]   ;;  %v1621_v11 = vld [vmem:[%s2313_s1 + $0x3a4] ss:$20 sps:$4 sm:$0xff]   ;;  %v1624_v16 = vld [vmem:[%s2313_s1 + $0xfc] ss:$20 sps:$4 sm:$0xff]  }
  0x19   :  { %1103 = vmatprep.subr.bf16.mxu1 %v1558_v25  ;;  %v12_v6 = vld [vmem:[%s2314_s0] sm:$0xff]  ;;  %v14_v8 = vld [vmem:[%s2314_s0 + $0x10] sm:$0xff]  ;;  %v1622_v18 = vld [vmem:[%s2313_s1 + $0xf8] ss:$20 sps:$4 sm:$0xff]  }
  0x1a   :  { %v16_v7 = vld [vmem:[%s2314_s0 + $0x20] sm:$0xf]  ;;  %v1989_v13 = vpack.c.bf16 %v18_v9, %v14_v8  ;;  %v1627_v17 = vld [vmem:[%s2313_s1 + $0x37c] ss:$20 sps:$4 sm:$0xff]   ;;  %v1625_v19 = vld [vmem:[%s2313_s1 + $0x378] ss:$20 sps:$4 sm:$0xff]  }
  0x1b   :  { %1061 = vmatpush1.bf16.msra.mxu0 %v1560_v26  ;;  %v1987_v12 = vpack.c.bf16 %v16_v7, %v12_v6  ;;  %v1616_v14 = vld [vmem:[%s2313_s1 + $0x120] ss:$20 sps:$4 sm:$0xff]   ;;  %v1628_v22 = vld [vmem:[%s2313_s1 + $0xd0] ss:$20 sps:$4 sm:$0xff]   ;;  %v1634_v26 = vld [vmem:[%s2313_s1 + $0xa8] ss:$20 sps:$4 sm:$0xff]  }
  0x1c   :  { %1104 = vmatpush1.bf16.msra.mxu1 %v1561_v27  ;;  %1062 = vmatprep.subr.bf16.mxu0 %v1562_v28  ;;  %v1619_v15 = vld [vmem:[%s2313_s1 + $0x3a0] ss:$20 sps:$4 sm:$0xff]   ;;  %v1631_v23 = vld [vmem:[%s2313_s1 + $0x350] ss:$20 sps:$4 sm:$0xff]   ;;  %v1637_v27 = vld [vmem:[%s2313_s1 + $0x328] ss:$20 sps:$4 sm:$0xff]  }
  0x1d   :  { %1105 = vmatprep.subr.bf16.mxu1 %v1564_v29  ;;  %v1630_v20 = vld [vmem:[%s2313_s1 + $0xd4] ss:$20 sps:$4 sm:$0xff]   ;;  %v1636_v24 = vld [vmem:[%s2313_s1 + $0xac] ss:$20 sps:$4 sm:$0xff]   ;;  %v1642_v28 = vld [vmem:[%s2313_s1 + $0x84] ss:$20 sps:$4 sm:$0xff]  }
  0x1e   :  { %v1633_v21 = vld [vmem:[%s2313_s1 + $0x354] ss:$20 sps:$4 sm:$0xff]   ;;  %v1639_v25 = vld [vmem:[%s2313_s1 + $0x32c] ss:$20 sps:$4 sm:$0xff]   ;;  %v1645_v29 = vld [vmem:[%s2313_s1 + $0x304] ss:$20 sps:$4 sm:$0xff]  }
  0x1f   :  { %1063 = vmatpush1.bf16.msra.mxu0 %v1566_v30  ;;  %v1640_v30 = vld [vmem:[%s2313_s1 + $0x80] ss:$20 sps:$4 sm:$0xff]   ;;  %v1672_v48 = vld [vmem:[%s2313_s1 + $0x23c] ss:$20 sps:$4 sm:$0xff]  }
  0x20   :  { %1106 = vmatpush1.bf16.msra.mxu1 %v1567_v31  ;;  %1064 = vmatprep.subr.bf16.mxu0 %v1568_v32  ;;  %v1643_v31 = vld [vmem:[%s2313_s1 + $0x300] ss:$20 sps:$4 sm:$0xff]   ;;  %v1648_v32 = vld [vmem:[%s2313_s1 + $0x5c] ss:$20 sps:$4 sm:$0xff]  }
  0x21   :  { %1107 = vmatprep.subr.bf16.mxu1 %v1570_v33  ;;  %v1651_v33 = vld [vmem:[%s2313_s1 + $0x2dc] ss:$20 sps:$4 sm:$0xff]   ;;  %v1664_v46 = vld [vmem:[%s2313_s1 + $0x260] ss:$20 sps:$4 sm:$0xff]  }
  0x22   :  { %v1667_v47 = vld [vmem:[%s2313_s1 + $0x4e0] ss:$20 sps:$4 sm:$0xff]   ;;  %v1675_v49 = vld [vmem:[%s2313_s1 + $0x4bc] ss:$20 sps:$4 sm:$0xff]  }
  0x23   :  { %1065 = vmatpush2.bf16.msra.mxu0 %v1572_v34  ;;  %v1646_v34 = vld [vmem:[%s2313_s1 + $0x58] ss:$20 sps:$4 sm:$0xff]   ;;  %v1702_v6 = vld [vmem:[%s2313_s1 + $0x174] ss:$20 sps:$4 sm:$0xff]   ;;  %v1700_v8 = vld [vmem:[%s2313_s1 + $0x170] ss:$20 sps:$4 sm:$0xff]  }
  0x24   :  { %1108 = vmatpush2.bf16.msra.mxu1 %v1573_v35  ;;  %1066 = vmatprep.subr.bf16.mxu0 %v1574_v36  ;;  %v1649_v35 = vld [vmem:[%s2313_s1 + $0x2d8] ss:$20 sps:$4 sm:$0xff]   ;;  %v1654_v36 = vld [vmem:[%s2313_s1 + $0x34] ss:$20 sps:$4 sm:$0xff]   ;;  %v1703_v9 = vld [vmem:[%s2313_s1 + $0x3f0] ss:$20 sps:$4 sm:$0xff]  }
  0x25   :  { %1109 = vmatprep.subr.bf16.mxu1 %v1576_v37  ;;  %v1657_v37 = vld [vmem:[%s2313_s1 + $0x2b4] ss:$20 sps:$4 sm:$0xff]  }
  0x26   :  { %v1705_v7 = vld [vmem:[%s2313_s1 + $0x3f4] ss:$20 sps:$4 sm:$0xff]  }
  0x27   :  { %1067 = vmatpush2.bf16.msra.mxu0 %v1578_v38  ;;  %v1652_v38 = vld [vmem:[%s2313_s1 + $0x30] ss:$20 sps:$4 sm:$0xff]  }
  0x28   :  { %1110 = vmatpush2.bf16.msra.mxu1 %v1579_v39  ;;  %1068 = vmatprep.subr.bf16.mxu0 %v1580_v40  ;;  %v1655_v39 = vld [vmem:[%s2313_s1 + $0x2b0] ss:$20 sps:$4 sm:$0xff]   ;;  %v1660_v40 = vld [vmem:[%s2313_s1 + $0xc] ss:$20 sps:$4 sm:$0xff]  }
  0x29   :  { %1111 = vmatprep.subr.bf16.mxu1 %v1582_v41  ;;  %v1663_v41 = vld [vmem:[%s2313_s1 + $0x28c] ss:$20 sps:$4 sm:$0xff]  }
  0x2b   :  { %1069 = vmatpush2.bf16.msra.mxu0 %v1584_v42  ;;  %v1658_v42 = vld [vmem:[%s2313_s1 + $0x8] ss:$20 sps:$4 sm:$0xff]  }
  0x2c   :  { %1112 = vmatpush2.bf16.msra.mxu1 %v1585_v43  ;;  %1070 = vmatprep.subr.bf16.mxu0 %v1586_v44  ;;  %v1661_v43 = vld [vmem:[%s2313_s1 + $0x288] ss:$20 sps:$4 sm:$0xff]   ;;  %v1666_v44 = vld [vmem:[%s2313_s1 + $0x264] ss:$20 sps:$4 sm:$0xff]  }
  0x2d   :  { %1113 = vmatprep.subr.bf16.mxu1 %v1588_v45  ;;  %v1669_v45 = vld [vmem:[%s2313_s1 + $0x4e4] ss:$20 sps:$4 sm:$0xff]  }
  0x2f   :  { %1071 = vmatpush2.bf16.msra.mxu0 %v1590_v50  ;;  %v1670_v50 = vld [vmem:[%s2313_s1 + $0x238] ss:$20 sps:$4 sm:$0xff]  }
  0x30   :  { %1114 = vmatpush2.bf16.msra.mxu1 %v1591_v51  ;;  %1072 = vmatprep.subr.bf16.mxu0 %v1592_v52  ;;  %v1673_v51 = vld [vmem:[%s2313_s1 + $0x4b8] ss:$20 sps:$4 sm:$0xff]   ;;  %v1678_v52 = vld [vmem:[%s2313_s1 + $0x214] ss:$20 sps:$4 sm:$0xff]  }
  0x31   :  { %1115 = vmatprep.subr.bf16.mxu1 %v1594_v55  ;;  %v1681_v55 = vld [vmem:[%s2313_s1 + $0x494] ss:$20 sps:$4 sm:$0xff]  }
  0x33   :  { %1073 = vmatpush2.bf16.msra.mxu0 %v1596_v56  ;;  %v1676_v56 = vld [vmem:[%s2313_s1 + $0x210] ss:$20 sps:$4 sm:$0xff]  }
  0x34   :  { %1116 = vmatpush2.bf16.msra.mxu1 %v1597_v57  ;;  %1074 = vmatprep.subr.bf16.mxu0 %v1598_v58  ;;  %v1679_v57 = vld [vmem:[%s2313_s1 + $0x490] ss:$20 sps:$4 sm:$0xff]   ;;  %v1684_v58 = vld [vmem:[%s2313_s1 + $0x1ec] ss:$20 sps:$4 sm:$0xff]  }
  0x35   :  { %1117 = vmatprep.subr.bf16.mxu1 %v1600_v59  ;;  %v1687_v59 = vld [vmem:[%s2313_s1 + $0x46c] ss:$20 sps:$4 sm:$0xff]  }
  0x37   :  { %1075 = vmatpush2.bf16.msra.mxu0 %v1602_v60  ;;  %v1682_v60 = vld [vmem:[%s2313_s1 + $0x1e8] ss:$20 sps:$4 sm:$0xff]  }
  0x38   :  { %1118 = vmatpush2.bf16.msra.mxu1 %v1603_v61  ;;  %1076 = vmatprep.subr.bf16.mxu0 %v1604_v62  ;;  %v1685_v61 = vld [vmem:[%s2313_s1 + $0x468] ss:$20 sps:$4 sm:$0xff]   ;;  %v1690_v62 = vld [vmem:[%s2313_s1 + $0x1c4] ss:$20 sps:$4 sm:$0xff]  }
  0x39   :  { %1119 = vmatprep.subr.bf16.mxu1 %v1606_v63  ;;  %v1693_v63 = vld [vmem:[%s2313_s1 + $0x444] ss:$20 sps:$4 sm:$0xff]  }
  0x3b   :  { %1077 = vmatpush2.bf16.msra.mxu0 %v1608_v0  ;;  %v1688_v0 = vld [vmem:[%s2313_s1 + $0x1c0] ss:$20 sps:$4 sm:$0xff]  }
  0x3c   :  { %1120 = vmatpush2.bf16.msra.mxu1 %v1609_v1  ;;  %1078 = vmatprep.subr.bf16.mxu0 %v1610_v2  ;;  %v1691_v1 = vld [vmem:[%s2313_s1 + $0x440] ss:$20 sps:$4 sm:$0xff]   ;;  %v1696_v2 = vld [vmem:[%s2313_s1 + $0x19c] ss:$20 sps:$4 sm:$0xff]  }
  0x3d   :  { %1121 = vmatprep.subr.bf16.mxu1 %v1612_v3  ;;  %v1699_v3 = vld [vmem:[%s2313_s1 + $0x41c] ss:$20 sps:$4 sm:$0xff]  }
  0x3f   :  { %1079 = vmatpush2.bf16.msra.mxu0 %v1614_v4  ;;  %v1694_v4 = vld [vmem:[%s2313_s1 + $0x198] ss:$20 sps:$4 sm:$0xff]  }
  0x40   :  { %1122 = vmatpush2.bf16.msra.mxu1 %v1615_v5  ;;  %1134 = vmatprep.subr.bf16.mxu0 %v1618_v10  ;;  %v1697_v5 = vld [vmem:[%s2313_s1 + $0x418] ss:$20 sps:$4 sm:$0xff]  }
  0x41   :  { %1177 = vmatprep.subr.bf16.mxu1 %v1621_v11  ;;  %v1708_v10 = vld [vmem:[%s2313_s1 + $0x14c] ss:$20 sps:$4 sm:$0xff]  }
  0x42   :  { %1081 = vmatmul.mubr.bf16.vlgmr.msra.gmra.mxu0 %v1987_v12  ;;  %v1711_v11 = vld [vmem:[%s2313_s1 + $0x3cc] ss:$20 sps:$4 sm:$0xff]  }
  0x43   :  { %1124 = vmatmul.mubr.bf16.vlgmr.msra.gmra.mxu1 %v1989_v13  ;;  %1135 = vmatpush1.bf16.msra.mxu0 %v1616_v14  ;;  %v1706_v14 = vld [vmem:[%s2313_s1 + $0x148] ss:$20 sps:$4 sm:$0xff]  }
  0x44   :  { %1178 = vmatpush1.bf16.msra.mxu1 %v1619_v15  ;;  %1136 = vmatprep.subr.bf16.mxu0 %v1624_v16  ;;  %v1709_v15 = vld [vmem:[%s2313_s1 + $0x3c8] ss:$20 sps:$4 sm:$0xff]  }
  0x45   :  { %1179 = vmatprep.subr.bf16.mxu1 %v1627_v17  ;;  %1166 = vmatprep.mubr.bf16.mxu0 %v1918_v53  ;;  %v1712_v16 = vld [vmem:[%s2313_s1 + $0x268] ss:$20 sps:$4 sm:$0xff]  }
  0x46   :  { %1209 = vmatprep.mubr.bf16.mxu1 %v1920_v54  ;;  %v1713_v17 = vld [vmem:[%s2313_s1 + $0x4e8] ss:$20 sps:$4 sm:$0xff]  }
  0x47   :  { %1137 = vmatpush1.bf16.msra.mxu0 %v1622_v18  ;;  %v1714_v18 = vld [vmem:[%s2313_s1 + $0x128] ss:$20 sps:$4 sm:$0xff]  }
  0x48   :  { %1180 = vmatpush1.bf16.msra.mxu1 %v1625_v19  ;;  %1138 = vmatprep.subr.bf16.mxu0 %v1630_v20  ;;  %v1715_v19 = vld [vmem:[%s2313_s1 + $0x3a8] ss:$20 sps:$4 sm:$0xff]   ;;  %v1716_v20 = vld [vmem:[%s2313_s1 + $0x240] ss:$20 sps:$4 sm:$0xff]  }
  0x49   :  { %1181 = vmatprep.subr.bf16.mxu1 %v1633_v21  ;;  %v1717_v21 = vld [vmem:[%s2313_s1 + $0x4c0] ss:$20 sps:$4 sm:$0xff]  }
  0x4b   :  { %1139 = vmatpush1.bf16.msra.mxu0 %v1628_v22  ;;  %v1718_v22 = vld [vmem:[%s2313_s1 + $0x100] ss:$20 sps:$4 sm:$0xff]  }
  0x4c   :  { %1182 = vmatpush1.bf16.msra.mxu1 %v1631_v23  ;;  %1140 = vmatprep.subr.bf16.mxu0 %v1636_v24  ;;  %v1719_v23 = vld [vmem:[%s2313_s1 + $0x380] ss:$20 sps:$4 sm:$0xff]   ;;  %v1720_v24 = vld [vmem:[%s2313_s1 + $0x218] ss:$20 sps:$4 sm:$0xff]  }
  0x4d   :  { %1183 = vmatprep.subr.bf16.mxu1 %v1639_v25  ;;  %v1721_v25 = vld [vmem:[%s2313_s1 + $0x498] ss:$20 sps:$4 sm:$0xff]  }
  0x4f   :  { %1141 = vmatpush1.bf16.msra.mxu0 %v1634_v26  ;;  %v1722_v26 = vld [vmem:[%s2313_s1 + $0xd8] ss:$20 sps:$4 sm:$0xff]  }
  0x50   :  { %1184 = vmatpush1.bf16.msra.mxu1 %v1637_v27  ;;  %1142 = vmatprep.subr.bf16.mxu0 %v1642_v28  ;;  %v1723_v27 = vld [vmem:[%s2313_s1 + $0x358] ss:$20 sps:$4 sm:$0xff]   ;;  %v1724_v28 = vld [vmem:[%s2313_s1 + $0x1f0] ss:$20 sps:$4 sm:$0xff]  }
  0x51   :  { %1185 = vmatprep.subr.bf16.mxu1 %v1645_v29  ;;  %v1727_v29 = vld [vmem:[%s2313_s1 + $0x330] ss:$20 sps:$4 sm:$0xff]  }
  0x53   :  { %1143 = vmatpush1.bf16.msra.mxu0 %v1640_v30  ;;  %v1728_v30 = vld [vmem:[%s2313_s1 + $0x1c8] ss:$20 sps:$4 sm:$0xff]  }
  0x54   :  { %1186 = vmatpush1.bf16.msra.mxu1 %v1643_v31  ;;  %1144 = vmatprep.subr.bf16.mxu0 %v1648_v32  ;;  %v1729_v31 = vld [vmem:[%s2313_s1 + $0x448] ss:$20 sps:$4 sm:$0xff]  }
  0x55   :  { %1187 = vmatprep.subr.bf16.mxu1 %v1651_v33  ;;  %v1730_v32 = vld [vmem:[%s2313_s1 + $0x88] ss:$20 sps:$4 sm:$0xff]  }
  0x56   :  { %v1731_v33 = vld [vmem:[%s2313_s1 + $0x308] ss:$20 sps:$4 sm:$0xff]  }
  0x57   :  { %1145 = vmatpush1.bf16.msra.mxu0 %v1646_v34  ;;  %v1732_v34 = vld [vmem:[%s2313_s1 + $0x1a0] ss:$20 sps:$4 sm:$0xff]  }
  0x58   :  { %1188 = vmatpush1.bf16.msra.mxu1 %v1649_v35  ;;  %1146 = vmatprep.subr.bf16.mxu0 %v1654_v36  ;;  %v1733_v35 = vld [vmem:[%s2313_s1 + $0x420] ss:$20 sps:$4 sm:$0xff]  }
  0x59   :  { %1189 = vmatprep.subr.bf16.mxu1 %v1657_v37  ;;  %v1734_v36 = vld [vmem:[%s2313_s1 + $0x60] ss:$20 sps:$4 sm:$0xff]  }
  0x5a   :  { %v1735_v37 = vld [vmem:[%s2313_s1 + $0x2e0] ss:$20 sps:$4 sm:$0xff]  }
  0x5b   :  { %1147 = vmatpush1.bf16.msra.mxu0 %v1652_v38  ;;  %v1736_v38 = vld [vmem:[%s2313_s1 + $0x178] ss:$20 sps:$4 sm:$0xff]  }
  0x5c   :  { %1190 = vmatpush1.bf16.msra.mxu1 %v1655_v39  ;;  %1148 = vmatprep.subr.bf16.mxu0 %v1660_v40  ;;  %v1737_v39 = vld [vmem:[%s2313_s1 + $0x3f8] ss:$20 sps:$4 sm:$0xff]  }
  0x5d   :  { %1191 = vmatprep.subr.bf16.mxu1 %v1663_v41  ;;  %v1738_v40 = vld [vmem:[%s2313_s1 + $0x38] ss:$20 sps:$4 sm:$0xff]  }
  0x5e   :  { %v1739_v41 = vld [vmem:[%s2313_s1 + $0x2b8] ss:$20 sps:$4 sm:$0xff]  }
  0x5f   :  { %1149 = vmatpush1.bf16.msra.mxu0 %v1658_v42  ;;  %v1740_v42 = vld [vmem:[%s2313_s1 + $0x150] ss:$20 sps:$4 sm:$0xff]  }
  0x60   :  { %1192 = vmatpush1.bf16.msra.mxu1 %v1661_v43  ;;  %1150 = vmatprep.subr.bf16.mxu0 %v1666_v44  ;;  %v1741_v43 = vld [vmem:[%s2313_s1 + $0x3d0] ss:$20 sps:$4 sm:$0xff]  }
  0x61   :  { %1193 = vmatprep.subr.bf16.mxu1 %v1669_v45  ;;  %v1742_v44 = vld [vmem:[%s2313_s1 + $0x10] ss:$20 sps:$4 sm:$0xff]  }
  0x62   :  { %v1743_v45 = vld [vmem:[%s2313_s1 + $0x290] ss:$20 sps:$4 sm:$0xff]  }
  0x63   :  { %1151 = vmatpush2.bf16.msra.mxu0 %v1664_v46 }
  0x64   :  { %1194 = vmatpush2.bf16.msra.mxu1 %v1667_v47  ;;  %1152 = vmatprep.subr.bf16.mxu0 %v1672_v48 }
  0x65   :  { %1195 = vmatprep.subr.bf16.mxu1 %v1675_v49 }
  0x67   :  { %1153 = vmatpush2.bf16.msra.mxu0 %v1670_v50 }
  0x68   :  { %1196 = vmatpush2.bf16.msra.mxu1 %v1673_v51  ;;  %1154 = vmatprep.subr.bf16.mxu0 %v1678_v52 }
  0x69   :  { %1197 = vmatprep.subr.bf16.mxu1 %v1681_v55 }
  0x6b   :  { %1155 = vmatpush2.bf16.msra.mxu0 %v1676_v56 }
  0x6c   :  { %1198 = vmatpush2.bf16.msra.mxu1 %v1679_v57  ;;  %1156 = vmatprep.subr.bf16.mxu0 %v1684_v58 }
  0x6d   :  { %1199 = vmatprep.subr.bf16.mxu1 %v1687_v59 }
  0x6f   :  { %1157 = vmatpush2.bf16.msra.mxu0 %v1682_v60 }
  0x70   :  { %1200 = vmatpush2.bf16.msra.mxu1 %v1685_v61  ;;  %1158 = vmatprep.subr.bf16.mxu0 %v1690_v62 }
  0x71   :  { %1201 = vmatprep.subr.bf16.mxu1 %v1693_v63 }
  0x73   :  { %1159 = vmatpush2.bf16.msra.mxu0 %v1688_v0 }
  0x74   :  { %1202 = vmatpush2.bf16.msra.mxu1 %v1691_v1  ;;  %1160 = vmatprep.subr.bf16.mxu0 %v1696_v2 }
  0x75   :  { %1203 = vmatprep.subr.bf16.mxu1 %v1699_v3 }
  0x77   :  { %1161 = vmatpush2.bf16.msra.mxu0 %v1694_v4 }
  0x78   :  { %1204 = vmatpush2.bf16.msra.mxu1 %v1697_v5  ;;  %1162 = vmatprep.subr.bf16.mxu0 %v1702_v6 }
  0x79   :  { %1205 = vmatprep.subr.bf16.mxu1 %v1705_v7 }
  0x7b   :  { %1163 = vmatpush2.bf16.msra.mxu0 %v1700_v8 }
  0x7c   :  { %1206 = vmatpush2.bf16.msra.mxu1 %v1703_v9  ;;  %1164 = vmatprep.subr.bf16.mxu0 %v1708_v10 }
  0x7d   :  { %1207 = vmatprep.subr.bf16.mxu1 %v1711_v11 }
  0x7f   :  { %1165 = vmatpush2.bf16.msra.mxu0 %v1706_v14 }
  0x80   :  { %1208 = vmatpush2.bf16.msra.mxu1 %v1709_v15  ;;  %1476 = vmatprep.subr.bf16.mxu0 %v1712_v16 }
  0x81   :  { %1498 = vmatprep.subr.bf16.mxu1 %v1713_v17 }
  0x82   :  { %1167 = vmatmul.mubr.bf16.vlgmr.msra.gmra.mxu0 %v1987_v12 }
  0x83   :  { %1210 = vmatmul.mubr.bf16.vlgmr.msra.gmra.mxu1 %v1989_v13  ;;  %1477 = vmatpush3.bf16.msra.mxu0 %v1714_v18 }
  0x84   :  { %1499 = vmatpush3.bf16.msra.mxu1 %v1715_v19  ;;  %1478 = vmatprep.subr.bf16.mxu0 %v1716_v20 }
  0x85   :  { %1500 = vmatprep.subr.bf16.mxu1 %v1717_v21  ;;  %1252 = vmatprep.mubr.bf16.mxu0 %v1918_v53  ;;  %v1725_v53 = vld [vmem:[%s2313_s1 + $0x470] ss:$20 sps:$4 sm:$0xff]  }
  0x86   :  { %1293 = vmatprep.mubr.bf16.mxu1 %v1920_v54  ;;  %v1726_v54 = vld [vmem:[%s2313_s1 + $0xb0] ss:$20 sps:$4 sm:$0xff]  }
  0x87   :  { %1479 = vmatpush3.bf16.msra.mxu0 %v1718_v22 }
  0x88   :  { %1501 = vmatpush3.bf16.msra.mxu1 %v1719_v23  ;;  %1480 = vmatprep.subr.bf16.mxu0 %v1720_v24 }
  0x89   :  { %1502 = vmatprep.subr.bf16.mxu1 %v1721_v25 }
  0x8b   :  { %1481 = vmatpush3.bf16.msra.mxu0 %v1722_v26 }
  0x8c   :  { %1503 = vmatpush3.bf16.msra.mxu1 %v1723_v27  ;;  %1482 = vmatprep.subr.bf16.mxu0 %v1724_v28 }
  0x8d   :  { %1504 = vmatprep.subr.bf16.mxu1 %v1725_v53 }
  0x8f   :  { %1483 = vmatpush3.bf16.msra.mxu0 %v1726_v54 }
  0x90   :  { %1505 = vmatpush3.bf16.msra.mxu1 %v1727_v29  ;;  %1484 = vmatprep.subr.bf16.mxu0 %v1728_v30 }
  0x91   :  { %1506 = vmatprep.subr.bf16.mxu1 %v1729_v31 }
  0x93   :  { %1485 = vmatpush3.bf16.msra.mxu0 %v1730_v32 }
  0x94   :  { %1507 = vmatpush3.bf16.msra.mxu1 %v1731_v33  ;;  %1486 = vmatprep.subr.bf16.mxu0 %v1732_v34 }
  0x95   :  { %1508 = vmatprep.subr.bf16.mxu1 %v1733_v35 }
  0x97   :  { %1487 = vmatpush3.bf16.msra.mxu0 %v1734_v36 }
  0x98   :  { %1509 = vmatpush3.bf16.msra.mxu1 %v1735_v37  ;;  %1488 = vmatprep.subr.bf16.mxu0 %v1736_v38 }
  0x99   :  { %1510 = vmatprep.subr.bf16.mxu1 %v1737_v39 }
  0x9b   :  { %1489 = vmatpush3.bf16.msra.mxu0 %v1738_v40 }
  0x9c   :  { %1511 = vmatpush3.bf16.msra.mxu1 %v1739_v41  ;;  %1490 = vmatprep.subr.bf16.mxu0 %v1740_v42 }
  0x9d   :  { %1512 = vmatprep.subr.bf16.mxu1 %v1741_v43 }
  0x9f   :  { %1491 = vmatpush3.bf16.msra.mxu0 %v1742_v44 }
  0xa0   :  { %1513 = vmatpush3.bf16.msra.mxu1 %v1743_v45 }
  0xa2   :  { %1253 = vmatmul.mubr.bf16.vlgmr.msra.gmra.mxu0 %v1987_v12 }
  0xa3   :  { %1294 = vmatmul.mubr.bf16.vlgmr.msra.gmra.mxu1 %v1989_v13 }
 0x102   :  { %v1082_v46 = vpop.f32.mrf.mxu0 }
 0x103   :  { %v1125_v47 = vpop.f32.mrf.mxu1 }
 0x104   :  { %v1126_v48 = vadd.f32 %v1125_v47, %v1082_v46  ;;  %v1084_v49 = vpop.f32.mrf.mxu0 }
 0x105   :  { %v1127_v50 = vpop.f32.mrf.mxu1 }
 0x106   :  { %1302 = vst [vmem:[%s2315_s2] sm:$0xff] %v1126_v48  ;;  %v1128_v51 = vadd.f32 %v1127_v50, %v1084_v49  ;;  %v1086_v52 = vpop.f32.mrf.mxu0 }
 0x107   :  { %v1129_v55 = vpop.f32.mrf.mxu1 }
 0x108   :  { %1303 = vst [vmem:[%s2315_s2 + $0x8] sm:$0xff] %v1128_v51  ;;  %v1130_v56 = vadd.f32 %v1129_v55, %v1086_v52  ;;  %v1088_v12 = vpop.f32.mrf.mxu0 }
 0x109   :  { %v1131_v57 = vpop.f32.mrf.mxu1 }
 0x10a   :  { %1307 = vst [vmem:[%s2315_s2 + $0x28] sm:$0xf] %v1130_v56  ;;  %v1132_v13 = vadd.f32 %v1131_v57, %v1088_v12 }
 0x10c   :  { %1308 = vst [vmem:[%s2315_s2 + $0x30] sm:$0xf] %v1132_v13 }
 0x142   :  { %v1168_v58 = vpop.f32.mrf.mxu0 }
 0x143   :  { %v1211_v59 = vpop.f32.mrf.mxu1 }
 0x144   :  { %v1212_v60 = vadd.f32 %v1211_v59, %v1168_v58  ;;  %v1170_v61 = vpop.f32.mrf.mxu0 }
 0x145   :  { %v1213_v62 = vpop.f32.mrf.mxu1 }
 0x146   :  { %1304 = vst [vmem:[%s2315_s2 + $0x10] sm:$0xff] %v1212_v60  ;;  %v1214_v63 = vadd.f32 %v1213_v62, %v1170_v61  ;;  %v1172_v0 = vpop.f32.mrf.mxu0 }
 0x147   :  { %v1215_v1 = vpop.f32.mrf.mxu1 }
 0x148   :  { %1305 = vst [vmem:[%s2315_s2 + $0x18] sm:$0xff] %v1214_v63  ;;  %v1216_v2 = vadd.f32 %v1215_v1, %v1172_v0  ;;  %v1174_v3 = vpop.f32.mrf.mxu0 }
 0x149   :  { %v1217_v4 = vpop.f32.mrf.mxu1 }
 0x14a   :  { %1309 = vst [vmem:[%s2315_s2 + $0x38] sm:$0xf] %v1216_v2  ;;  %v1218_v5 = vadd.f32 %v1217_v4, %v1174_v3 }
 0x14c   :  { %1310 = vst [vmem:[%s2315_s2 + $0x40] sm:$0xf] %v1218_v5 }
 0x162   :  { %v1492_v6 = vpop.f32.mrf.mxu0 }
 0x163   :  { %v1514_v7 = vpop.f32.mrf.mxu1 }
 0x164   :  { %v1493_v8 = vpop.f32.mrf.mxu0 }
 0x165   :  { %v1515_v9 = vpop.f32.mrf.mxu1  ;;  %v1494_v10 = vadd.f32 %v1493_v8, %v1492_v6 }
 0x166   :  { %v1516_v11 = vadd.f32 %v1515_v9, %v1514_v7  ;;  %v1495_v14 = vpop.f32.mrf.mxu0 }
 0x167   :  { %v1517_v15 = vpop.f32.mrf.mxu1 }
 0x168   :  { %v1296_v16 = vadd.f32 %v1516_v11, %v1494_v10  ;;  %v1496_v17 = vpop.f32.mrf.mxu0 }
 0x169   :  { %v1518_v18 = vpop.f32.mrf.mxu1  ;;  %v1497_v19 = vadd.f32 %v1496_v17, %v1495_v14 }
 0x16a   :  { %1306 = vst [vmem:[%s2315_s2 + $0x20] sm:$0xff] %v1296_v16  ;;  %v1519_v20 = vadd.f32 %v1518_v18, %v1517_v15 }
 0x16c   :  { %v1299_v21 = vadd.f32 %v1519_v20, %v1497_v19 }
 0x16e   :  { %1311 = vst [vmem:[%s2315_s2 + $0x48] sm:$0xf] %v1299_v21 }

// kernel: net_forward.11
= control target key start
LH: loop header
LB: loop body
LE: loop exit
PB: predicated region body
PF: predicated region fallthrough
CT: control target
= control target key end

     0   :  { %v956_v30 = vmov 1983009808   ;;  %v170_v32 = vlaneseq  ;;  %s1509_s0 = inlined_call_operand.vmem [shape: f32[2,1024], index: 0, kind: input, shape index: {}]   ;;  %s1510_s1 = inlined_call_operand.vmem [shape: f32[1024,128], index: 1, kind: input, shape index: {}]   ;;  %s1511_s2 = inlined_call_operand.vmem [shape: f32[1,128], index: 2, kind: input, shape index: {}]   ;;  %s1512_s3 = inlined_call_operand.vmem [shape: f32[128,64], index: 3, kind: input, shape index: {}]   ;;  %s1513_s4 = inlined_call_operand.vmem [shape: f32[1,64], index: 4, kind: input, shape index: {}]   ;;  %s1514_s5 = inlined_call_operand.vmem [shape: f32[64,8], index: 5, kind: input, shape index: {}]   ;;  %s1515_s6 = inlined_call_operand.vmem [shape: f32[1,8], index: 6, kind: input, shape index: {}]   ;;  %s1516_s7 = inlined_call_operand.hbm [shape: f32[2,8], index: 7, kind: output, shape index: {}]  }
   0x1   :  { %v60_v0 = vld [vmem:[%s1510_s1 + $0xf8] sm:$0xff]  ;;  %v59_v4 = vld [vmem:[%s1510_s1 + $0xf0] sm:$0xff]  ;;  %v58_v8 = vld [vmem:[%s1510_s1 + $0xe8] sm:$0xff]  ;;  %v168_v31 = vunpack.c.l.s4 %v956_v30 }
   0x2   :  { %v92_v1 = vld [vmem:[%s1510_s1 + $0x1f8] sm:$0xff]  ;;  %704 = vmatprep.subr.mxu0 %v60_v0  ;;  %v91_v5 = vld [vmem:[%s1510_s1 + $0x1f0] sm:$0xff]  ;;  %v90_v9 = vld [vmem:[%s1510_s1 + $0x1e8] sm:$0xff]  ;;  %v171_v42 = vshrl.u32 %v170_v32, 7 }
   0x3   :  { %v44_v2 = vld [vmem:[%s1510_s1 + $0x78] sm:$0xff]  ;;  %739 = vmatprep.subr.mxu1 %v92_v1  ;;  %v43_v6 = vld [vmem:[%s1510_s1 + $0x70] sm:$0xff]  ;;  %v42_v10 = vld [vmem:[%s1510_s1 + $0x68] sm:$0xff]  ;;  %v169_v41 = vunpack.c.0.s8 %v168_v31 }
   0x4   :  { %v76_v3 = vld [vmem:[%s1510_s1 + $0x178] sm:$0xff]  ;;  %705 = vmatpush3.msra.mxu0 %v44_v2  ;;  %v75_v7 = vld [vmem:[%s1510_s1 + $0x170] sm:$0xff]  ;;  %v74_v11 = vld [vmem:[%s1510_s1 + $0x168] sm:$0xff] }
   0x5   :  { %740 = vmatpush3.msra.mxu1 %v76_v3  ;;  %706 = vmatprep.subr.mxu0 %v59_v4  ;;  %v57_v12 = vld [vmem:[%s1510_s1 + $0xe0] sm:$0xff]  ;;  %v56_v16 = vld [vmem:[%s1510_s1 + $0xd8] sm:$0xff]  ;;  %v55_v20 = vld [vmem:[%s1510_s1 + $0xd0] sm:$0xff]  ;;  %v1138_v51 = vsub.s32 %v169_v41, %v171_v42 }
   0x6   :  { %741 = vmatprep.subr.mxu1 %v91_v5  ;;  %707 = vmatpush3.msra.mxu0 %v43_v6  ;;  %v89_v13 = vld [vmem:[%s1510_s1 + $0x1e0] sm:$0xff]  ;;  %v88_v17 = vld [vmem:[%s1510_s1 + $0x1d8] sm:$0xff]  ;;  %v87_v21 = vld [vmem:[%s1510_s1 + $0x1d0] sm:$0xff] }
   0x7   :  { %742 = vmatpush3.msra.mxu1 %v75_v7  ;;  %708 = vmatprep.subr.mxu0 %v58_v8  ;;  %v41_v14 = vld [vmem:[%s1510_s1 + $0x60] sm:$0xff]  ;;  %v40_v18 = vld [vmem:[%s1510_s1 + $0x58] sm:$0xff]  ;;  %v39_v22 = vld [vmem:[%s1510_s1 + $0x50] sm:$0xff] }
   0x8   :  { %743 = vmatprep.subr.mxu1 %v90_v9  ;;  %v73_v15 = vld [vmem:[%s1510_s1 + $0x160] sm:$0xff]  ;;  %709 = vmatpush3.msra.mxu0 %v42_v10  ;;  %v72_v19 = vld [vmem:[%s1510_s1 + $0x158] sm:$0xff]  ;;  %v71_v23 = vld [vmem:[%s1510_s1 + $0x150] sm:$0xff] }
   0x9   :  { %744 = vmatpush3.msra.mxu1 %v74_v11  ;;  %710 = vmatprep.subr.mxu0 %v57_v12  ;;  %v54_v24 = vld [vmem:[%s1510_s1 + $0xc8] sm:$0xff]  ;;  %v53_v28 = vld [vmem:[%s1510_s1 + $0xc0] sm:$0xff]  ;;  %v52_v35 = vld [vmem:[%s1510_s1 + $0xb8] sm:$0xff] }
   0xa   :  { %745 = vmatprep.subr.mxu1 %v89_v13  ;;  %711 = vmatpush3.msra.mxu0 %v41_v14  ;;  %v86_v25 = vld [vmem:[%s1510_s1 + $0x1c8] sm:$0xff]  ;;  %v85_v29 = vld [vmem:[%s1510_s1 + $0x1c0] sm:$0xff]  ;;  %v84_v36 = vld [vmem:[%s1510_s1 + $0x1b8] sm:$0xff] }
   0xb   :  { %746 = vmatpush3.msra.mxu1 %v73_v15  ;;  %712 = vmatprep.subr.mxu0 %v56_v16  ;;  %v38_v26 = vld [vmem:[%s1510_s1 + $0x48] sm:$0xff]  ;;  %v37_v33 = vld [vmem:[%s1510_s1 + $0x40] sm:$0xff]  ;;  %v36_v37 = vld [vmem:[%s1510_s1 + $0x38] sm:$0xff] }
   0xc   :  { %747 = vmatprep.subr.mxu1 %v88_v17  ;;  %713 = vmatpush3.msra.mxu0 %v40_v18  ;;  %v70_v27 = vld [vmem:[%s1510_s1 + $0x148] sm:$0xff]  ;;  %v69_v34 = vld [vmem:[%s1510_s1 + $0x140] sm:$0xff]  ;;  %v68_v38 = vld [vmem:[%s1510_s1 + $0x138] sm:$0xff] }
   0xd   :  { %748 = vmatpush3.msra.mxu1 %v72_v19  ;;  %714 = vmatprep.subr.mxu0 %v55_v20  ;;  %v51_v39 = vld [vmem:[%s1510_s1 + $0xb0] sm:$0xff]  ;;  %v50_v45 = vld [vmem:[%s1510_s1 + $0xa8] sm:$0xff]  ;;  %v49_v49 = vld [vmem:[%s1510_s1 + $0xa0] sm:$0xff] }
   0xe   :  { %749 = vmatprep.subr.mxu1 %v87_v21  ;;  %715 = vmatpush3.msra.mxu0 %v39_v22  ;;  %v83_v40 = vld [vmem:[%s1510_s1 + $0x1b0] sm:$0xff]  ;;  %v82_v46 = vld [vmem:[%s1510_s1 + $0x1a8] sm:$0xff]  ;;  %v81_v50 = vld [vmem:[%s1510_s1 + $0x1a0] sm:$0xff] }
   0xf   :  { %750 = vmatpush3.msra.mxu1 %v71_v23  ;;  %716 = vmatprep.subr.mxu0 %v54_v24  ;;  %v35_v43 = vld [vmem:[%s1510_s1 + $0x30] sm:$0xff]  ;;  %v34_v47 = vld [vmem:[%s1510_s1 + $0x28] sm:$0xff]  ;;  %v33_v52 = vld [vmem:[%s1510_s1 + $0x20] sm:$0xff] }
  0x10   :  { %751 = vmatprep.subr.mxu1 %v86_v25  ;;  %717 = vmatpush3.msra.mxu0 %v38_v26  ;;  %v67_v44 = vld [vmem:[%s1510_s1 + $0x130] sm:$0xff]  ;;  %v66_v48 = vld [vmem:[%s1510_s1 + $0x128] sm:$0xff]  ;;  %v65_v53 = vld [vmem:[%s1510_s1 + $0x120] sm:$0xff] }
  0x11   :  { %752 = vmatpush3.msra.mxu1 %v70_v27  ;;  %718 = vmatprep.subr.mxu0 %v53_v28  ;;  %v27_v54 = vld [vmem:[%s1509_s0] sm:$0xff]  ;;  %v48_v55 = vld [vmem:[%s1510_s1 + $0x98] sm:$0xff]  ;;  %v47_v60 = vld [vmem:[%s1510_s1 + $0x90] sm:$0xff] }
  0x12   :  { %753 = vmatprep.subr.mxu1 %v85_v29  ;;  %719 = vmatpush3.msra.mxu0 %v37_v33  ;;  %v80_v56 = vld [vmem:[%s1510_s1 + $0x198] sm:$0xff]  ;;  %v166_v57 = vcombine.high %v27_v54, %v27_v54  ;;  %v79_v61 = vld [vmem:[%s1510_s1 + $0x190] sm:$0xff]  ;;  %v173_v62 = vrot.slane %v27_v54, %v1138_v51  ;;  %v46_v1 = vld [vmem:[%s1510_s1 + $0x88] sm:$0xff] }
  0x13   :  { %754 = vmatpush3.msra.mxu1 %v69_v34  ;;  %720 = vmatprep.subr.mxu0 %v52_v35  ;;  %v32_v58 = vld [vmem:[%s1510_s1 + $0x18] sm:$0xff]  ;;  %v31_v63 = vld [vmem:[%s1510_s1 + $0x10] sm:$0xff]  ;;  %v78_v2 = vld [vmem:[%s1510_s1 + $0x188] sm:$0xff] }
  0x14   :  { %755 = vmatprep.subr.mxu1 %v84_v36  ;;  %721 = vmatpush3.msra.mxu0 %v36_v37  ;;  %v64_v59 = vld [vmem:[%s1510_s1 + $0x118] sm:$0xff]  ;;  %v63_v0 = vld [vmem:[%s1510_s1 + $0x110] sm:$0xff]  ;;  %v180_v3 = vrot.slane %v166_v57, %v1138_v51  ;;  %v30_v4 = vld [vmem:[%s1510_s1 + $0x8] sm:$0xff]  ;;  %v181_v8 = vcombine.high %v173_v62, %v173_v62 }
  0x15   :  { %756 = vmatpush3.msra.mxu1 %v68_v38  ;;  %722 = vmatprep.subr.mxu0 %v51_v39  ;;  %v62_v5 = vld [vmem:[%s1510_s1 + $0x108] sm:$0xff]  ;;  %v45_v6 = vld [vmem:[%s1510_s1 + $0x80] sm:$0xff]  ;;  %v124_v12 = vld [vmem:[%s1510_s1 + $0x2f8] sm:$0xff] }
  0x16   :  { %757 = vmatprep.subr.mxu1 %v83_v40  ;;  %723 = vmatpush3.msra.mxu0 %v35_v43  ;;  %v77_v7 = vld [vmem:[%s1510_s1 + $0x180] sm:$0xff]  ;;  %v182_v11 = vcombine.high %v180_v3, %v180_v3  ;;  %v156_v13 = vld [vmem:[%s1510_s1 + $0x3f8] sm:$0xff]  ;;  %v123_v16 = vld [vmem:[%s1510_s1 + $0x2f0] sm:$0xff] }
  0x17   :  { %758 = vmatpush3.msra.mxu1 %v67_v44  ;;  %724 = vmatprep.subr.mxu0 %v50_v45  ;;  %v29_v9 = vld [vmem:[%s1510_s1] sm:$0xff]  ;;  %v108_v14 = vld [vmem:[%s1510_s1 + $0x278] sm:$0xff]  ;;  %v155_v17 = vld [vmem:[%s1510_s1 + $0x3f0] sm:$0xff] }
  0x18   :  { %759 = vmatprep.subr.mxu1 %v82_v46  ;;  %725 = vmatpush3.msra.mxu0 %v34_v47  ;;  %v61_v10 = vld [vmem:[%s1510_s1 + $0x100] sm:$0xff]  ;;  %v140_v15 = vld [vmem:[%s1510_s1 + $0x378] sm:$0xff]  ;;  %v107_v18 = vld [vmem:[%s1510_s1 + $0x270] sm:$0xff] }
  0x19   :  { %760 = vmatpush3.msra.mxu1 %v66_v48  ;;  %726 = vmatprep.subr.mxu0 %v49_v49  ;;  %v139_v19 = vld [vmem:[%s1510_s1 + $0x370] sm:$0xff]  ;;  %v122_v20 = vld [vmem:[%s1510_s1 + $0x2e8] sm:$0xff]  ;;  %v121_v24 = vld [vmem:[%s1510_s1 + $0x2e0] sm:$0xff] }
  0x1a   :  { %761 = vmatprep.subr.mxu1 %v81_v50  ;;  %727 = vmatpush3.msra.mxu0 %v33_v52  ;;  %v154_v21 = vld [vmem:[%s1510_s1 + $0x3e8] sm:$0xff]  ;;  %v153_v25 = vld [vmem:[%s1510_s1 + $0x3e0] sm:$0xff]  ;;  %v120_v28 = vld [vmem:[%s1510_s1 + $0x2d8] sm:$0xff] }
  0x1b   :  { %762 = vmatpush3.msra.mxu1 %v65_v53  ;;  %728 = vmatprep.subr.mxu0 %v48_v55  ;;  %v106_v22 = vld [vmem:[%s1510_s1 + $0x268] sm:$0xff]  ;;  %v105_v26 = vld [vmem:[%s1510_s1 + $0x260] sm:$0xff]  ;;  %v152_v29 = vld [vmem:[%s1510_s1 + $0x3d8] sm:$0xff] }
  0x1c   :  { %763 = vmatprep.subr.mxu1 %v80_v56  ;;  %729 = vmatpush3.msra.mxu0 %v32_v58  ;;  %v138_v23 = vld [vmem:[%s1510_s1 + $0x368] sm:$0xff]  ;;  %v137_v27 = vld [vmem:[%s1510_s1 + $0x360] sm:$0xff]  ;;  %v104_v30 = vld [vmem:[%s1510_s1 + $0x258] sm:$0xff] }
  0x1d   :  { %764 = vmatpush3.msra.mxu1 %v64_v59  ;;  %730 = vmatprep.subr.mxu0 %v47_v60  ;;  %v136_v31 = vld [vmem:[%s1510_s1 + $0x358] sm:$0xff]  ;;  %v119_v32 = vld [vmem:[%s1510_s1 + $0x2d0] sm:$0xff] }
  0x1e   :  { %765 = vmatprep.subr.mxu1 %v79_v61  ;;  %731 = vmatpush3.msra.mxu0 %v31_v63  ;;  %v151_v33 = vld [vmem:[%s1510_s1 + $0x3d0] sm:$0xff] }
  0x1f   :  { %766 = vmatpush3.msra.mxu1 %v63_v0  ;;  %732 = vmatprep.subr.mxu0 %v46_v1  ;;  %v103_v34 = vld [vmem:[%s1510_s1 + $0x250] sm:$0xff] }
  0x20   :  { %767 = vmatprep.subr.mxu1 %v78_v2  ;;  %733 = vmatpush3.msra.mxu0 %v30_v4  ;;  %v135_v35 = vld [vmem:[%s1510_s1 + $0x350] sm:$0xff] }
  0x21   :  { %768 = vmatpush3.msra.mxu1 %v62_v5  ;;  %734 = vmatprep.subr.mxu0 %v45_v6 }
  0x22   :  { %769 = vmatprep.subr.mxu1 %v77_v7  ;;  %735 = vmatpush3.msra.mxu0 %v29_v9 }
  0x23   :  { %272 = vmatprep.mubr.f32.mxu0 %v181_v8  ;;  %770 = vmatpush3.msra.mxu1 %v61_v10 }
  0x24   :  { %273 = vmatmul.mubr.f32.vlgmr.msra.gmra.mxu0 %v173_v62  ;;  %342 = vmatprep.mubr.f32.mxu1 %v182_v11 }
  0x25   :  { %774 = vmatprep.subr.mxu0 %v124_v12  ;;  %809 = vmatprep.subr.mxu1 %v156_v13 }
  0x26   :  { %343 = vmatmul.mubr.f32.vlgmr.msra.gmra.mxu1 %v180_v3  ;;  %775 = vmatpush3.msra.mxu0 %v108_v14 }
  0x27   :  { %810 = vmatpush3.msra.mxu1 %v140_v15  ;;  %776 = vmatprep.subr.mxu0 %v123_v16 }
  0x28   :  { %811 = vmatprep.subr.mxu1 %v155_v17  ;;  %777 = vmatpush3.msra.mxu0 %v107_v18 }
  0x29   :  { %812 = vmatpush3.msra.mxu1 %v139_v19  ;;  %778 = vmatprep.subr.mxu0 %v122_v20 }
  0x2a   :  { %813 = vmatprep.subr.mxu1 %v154_v21  ;;  %779 = vmatpush3.msra.mxu0 %v106_v22 }
  0x2b   :  { %814 = vmatpush3.msra.mxu1 %v138_v23  ;;  %780 = vmatprep.subr.mxu0 %v121_v24 }
  0x2c   :  { %815 = vmatprep.subr.mxu1 %v153_v25  ;;  %781 = vmatpush3.msra.mxu0 %v105_v26 }
  0x2d   :  { %816 = vmatpush3.msra.mxu1 %v137_v27  ;;  %782 = vmatprep.subr.mxu0 %v120_v28 }
  0x2e   :  { %817 = vmatprep.subr.mxu1 %v152_v29 }
  0x2f   :  { %12 = vsyncpa [#allocation3], 0  ;;  %783 = vmatpush3.msra.mxu0 %v104_v30  ;;  %818 = vmatpush3.msra.mxu1 %v136_v31  ;;  %v118_v36 = vld [vmem:[%s1510_s1 + $0x2c8] sm:$0xff]  ;;  %v117_v40 = vld [vmem:[%s1510_s1 + $0x2c0] sm:$0xff]  ;;  %v957_v19 = vmov 0.0   ;;  %vm958_vm0 = vmmov 0  }
  0x30   :  { %v150_v37 = vld [vmem:[%s1510_s1 + $0x3c8] sm:$0xff]  ;;  %784 = vmatprep.subr.mxu0 %v119_v32  ;;  %819 = vmatprep.subr.mxu1 %v151_v33  ;;  %v149_v41 = vld [vmem:[%s1510_s1 + $0x3c0] sm:$0xff]  ;;  %v116_v44 = vld [vmem:[%s1510_s1 + $0x2b8] sm:$0xff]  ;;  %vm598_vm1 = vcmask 523264   ;;  %vm672_vm2 = vcmask 58368  }
  0x31   :  { %v102_v38 = vld [vmem:[%s1510_s1 + $0x248] sm:$0xff]  ;;  %785 = vmatpush3.msra.mxu0 %v103_v34  ;;  %820 = vmatpush3.msra.mxu1 %v135_v35  ;;  %v101_v42 = vld [vmem:[%s1510_s1 + $0x240] sm:$0xff]  ;;  %v148_v45 = vld [vmem:[%s1510_s1 + $0x3b8] sm:$0xff] }
  0x32   :  { %v134_v39 = vld [vmem:[%s1510_s1 + $0x348] sm:$0xff]  ;;  %786 = vmatprep.subr.mxu0 %v118_v36  ;;  %821 = vmatprep.subr.mxu1 %v150_v37  ;;  %v133_v43 = vld [vmem:[%s1510_s1 + $0x340] sm:$0xff]  ;;  %v100_v46 = vld [vmem:[%s1510_s1 + $0x238] sm:$0xff] }
  0x33   :  { %787 = vmatpush3.msra.mxu0 %v102_v38  ;;  %822 = vmatpush3.msra.mxu1 %v134_v39  ;;  %v132_v47 = vld [vmem:[%s1510_s1 + $0x338] sm:$0xff]  ;;  %v115_v48 = vld [vmem:[%s1510_s1 + $0x2b0] sm:$0xff]  ;;  %v114_v53 = vld [vmem:[%s1510_s1 + $0x2a8] sm:$0xff] }
  0x34   :  { %788 = vmatprep.subr.mxu0 %v117_v40  ;;  %823 = vmatprep.subr.mxu1 %v149_v41  ;;  %v147_v49 = vld [vmem:[%s1510_s1 + $0x3b0] sm:$0xff]  ;;  %v146_v54 = vld [vmem:[%s1510_s1 + $0x3a8] sm:$0xff]  ;;  %v113_v58 = vld [vmem:[%s1510_s1 + $0x2a0] sm:$0xff] }
  0x35   :  { %789 = vmatpush3.msra.mxu0 %v101_v42  ;;  %824 = vmatpush3.msra.mxu1 %v133_v43  ;;  %v99_v50 = vld [vmem:[%s1510_s1 + $0x230] sm:$0xff]  ;;  %v28_v55 = vld [vmem:[%s1509_s0 + $0x8] sm:$0xff]  ;;  %v145_v59 = vld [vmem:[%s1510_s1 + $0x3a0] sm:$0xff] }
  0x36   :  { %790 = vmatprep.subr.mxu0 %v116_v44  ;;  %825 = vmatprep.subr.mxu1 %v148_v45  ;;  %v131_v52 = vld [vmem:[%s1510_s1 + $0x330] sm:$0xff]  ;;  %v98_v56 = vld [vmem:[%s1510_s1 + $0x228] sm:$0xff]  ;;  %v97_v60 = vld [vmem:[%s1510_s1 + $0x220] sm:$0xff]  ;;  %v183_v62 = vcombine.high %v28_v55, %v28_v55  ;;  %v190_v5 = vrot.slane %v28_v55, %v1138_v51 }
  0x37   :  { %791 = vmatpush3.msra.mxu0 %v100_v46  ;;  %826 = vmatpush3.msra.mxu1 %v132_v47  ;;  %v130_v57 = vld [vmem:[%s1510_s1 + $0x328] sm:$0xff]  ;;  %v129_v61 = vld [vmem:[%s1510_s1 + $0x320] sm:$0xff]  ;;  %v112_v63 = vld [vmem:[%s1510_s1 + $0x298] sm:$0xff] }
  0x38   :  { %792 = vmatprep.subr.mxu0 %v115_v48  ;;  %827 = vmatprep.subr.mxu1 %v147_v49  ;;  %v144_v0 = vld [vmem:[%s1510_s1 + $0x398] sm:$0xff]  ;;  %v111_v3 = vld [vmem:[%s1510_s1 + $0x290] sm:$0xff]  ;;  %v197_v8 = vrot.slane %v183_v62, %v1138_v51  ;;  %v110_v9 = vld [vmem:[%s1510_s1 + $0x288] sm:$0xff]  ;;  %v198_v14 = vcombine.high %v190_v5, %v190_v5 }
  0x39   :  { %793 = vmatpush3.msra.mxu0 %v99_v50  ;;  %828 = vmatpush3.msra.mxu1 %v131_v52  ;;  %v96_v1 = vld [vmem:[%s1510_s1 + $0x218] sm:$0xff]  ;;  %v143_v4 = vld [vmem:[%s1510_s1 + $0x390] sm:$0xff]  ;;  %v142_v10 = vld [vmem:[%s1510_s1 + $0x388] sm:$0xff] }
  0x3a   :  { %794 = vmatprep.subr.mxu0 %v114_v53  ;;  %829 = vmatprep.subr.mxu1 %v146_v54  ;;  %v128_v2 = vld [vmem:[%s1510_s1 + $0x318] sm:$0xff]  ;;  %v95_v6 = vld [vmem:[%s1510_s1 + $0x210] sm:$0xff]  ;;  %v94_v11 = vld [vmem:[%s1510_s1 + $0x208] sm:$0xff]  ;;  %v199_v16 = vcombine.high %v197_v8, %v197_v8 }
  0x3b   :  { %795 = vmatpush3.msra.mxu0 %v98_v56  ;;  %830 = vmatpush3.msra.mxu1 %v130_v57  ;;  %v127_v7 = vld [vmem:[%s1510_s1 + $0x310] sm:$0xff]  ;;  %v126_v51 = vld [vmem:[%s1510_s1 + $0x308] sm:$0xff]  ;;  %v109_v12 = vld [vmem:[%s1510_s1 + $0x280] sm:$0xff] }
  0x3c   :  { %796 = vmatprep.subr.mxu0 %v113_v58  ;;  %831 = vmatprep.subr.mxu1 %v145_v59  ;;  %v141_v13 = vld [vmem:[%s1510_s1 + $0x380] sm:$0xff]  ;;  %v504_v18 = vld [vmem:[%s1512_s3 + $0x78] sm:$0xff]  ;;  %v503_v20 = vld [vmem:[%s1512_s3 + $0x70] sm:$0xff] }
  0x3d   :  { %797 = vmatpush3.msra.mxu0 %v97_v60  ;;  %832 = vmatpush3.msra.mxu1 %v129_v61  ;;  %v93_v15 = vld [vmem:[%s1510_s1 + $0x200] sm:$0xff]  ;;  %v502_v21 = vld [vmem:[%s1512_s3 + $0x68] sm:$0xff]  ;;  %v500_v23 = vld [vmem:[%s1512_s3 + $0x58] sm:$0xff] }
  0x3e   :  { %798 = vmatprep.subr.mxu0 %v112_v63  ;;  %833 = vmatprep.subr.mxu1 %v144_v0  ;;  %v125_v17 = vld [vmem:[%s1510_s1 + $0x300] sm:$0xff]  ;;  %v499_v24 = vld [vmem:[%s1512_s3 + $0x50] sm:$0xff]  ;;  %v498_v25 = vld [vmem:[%s1512_s3 + $0x48] sm:$0xff] }
  0x3f   :  { %799 = vmatpush3.msra.mxu0 %v96_v1  ;;  %834 = vmatpush3.msra.mxu1 %v128_v2  ;;  %v501_v22 = vld [vmem:[%s1512_s3 + $0x60] sm:$0xff]  ;;  %v496_v27 = vld [vmem:[%s1512_s3 + $0x38] sm:$0xff]  ;;  %v495_v28 = vld [vmem:[%s1512_s3 + $0x30] sm:$0xff] }
  0x40   :  { %800 = vmatprep.subr.mxu0 %v111_v3  ;;  %835 = vmatprep.subr.mxu1 %v143_v4  ;;  %v497_v26 = vld [vmem:[%s1512_s3 + $0x40] sm:$0xff]  ;;  %v494_v29 = vld [vmem:[%s1512_s3 + $0x28] sm:$0xff]  ;;  %v492_v31 = vld [vmem:[%s1512_s3 + $0x18] sm:$0xff] }
  0x41   :  { %801 = vmatpush3.msra.mxu0 %v95_v6  ;;  %836 = vmatpush3.msra.mxu1 %v127_v7  ;;  %v493_v30 = vld [vmem:[%s1512_s3 + $0x20] sm:$0xff]  ;;  %v491_v32 = vld [vmem:[%s1512_s3 + $0x10] sm:$0xff]  ;;  %v490_v33 = vld [vmem:[%s1512_s3 + $0x8] sm:$0xff] }
  0x42   :  { %802 = vmatprep.subr.mxu0 %v110_v9  ;;  %837 = vmatprep.subr.mxu1 %v142_v10  ;;  %v489_v34 = vld [vmem:[%s1512_s3] sm:$0xff]  ;;  %v590_v35 = vld [vmem:[%s1514_s5 + $0x38] sm:$0xff]  ;;  %v589_v36 = vld [vmem:[%s1514_s5 + $0x30] sm:$0xff] }
  0x43   :  { %803 = vmatpush3.msra.mxu0 %v94_v11  ;;  %838 = vmatpush3.msra.mxu1 %v126_v51  ;;  %v588_v37 = vld [vmem:[%s1514_s5 + $0x28] sm:$0xff]  ;;  %v587_v38 = vld [vmem:[%s1514_s5 + $0x20] sm:$0xff]  ;;  %v586_v39 = vld [vmem:[%s1514_s5 + $0x18] sm:$0xff] }
  0x44   :  { %804 = vmatprep.subr.mxu0 %v109_v12  ;;  %839 = vmatprep.subr.mxu1 %v141_v13  ;;  %v700_v44 = vld [vmem:[%s1511_s2] ss:$0 sm:$0xff]  ;;  %v585_v59 = vld [vmem:[%s1514_s5 + $0x10] sm:$0xff]  ;;  %v584_v60 = vld [vmem:[%s1514_s5 + $0x8] sm:$0xff] }
  0x45   :  { %805 = vmatpush3.msra.mxu0 %v93_v15  ;;  %412 = vmatprep.mubr.f32.mxu0 %v198_v14  ;;  %v583_v61 = vld [vmem:[%s1514_s5] sm:$0xff] }
  0x46   :  { %840 = vmatpush3.msra.mxu1 %v125_v17  ;;  %482 = vmatprep.mubr.f32.mxu1 %v199_v16  ;;  %v701_v62 = vld [vmem:[%s1513_s4] ss:$0 sm:$0xff]  ;;  %s959_s4 = smov [#allocation2]  }
  0x47   :  { %413 = vmatmul.mubr.f32.vlgmr.msra.gmra.mxu0 %v190_v5  ;;  %483 = vmatmul.mubr.f32.vlgmr.msra.gmra.mxu1 %v197_v8  ;;  %v702_v3 = vld [vmem:[%s1515_s6] ss:$0 sm:$0xff]  ;;  %s692_s5 = sshll.u32 %s959_s4, 4  ;;  %s693_s5 = int_to_ptr.vmem [resolvable:$true] %s692_s5 }
  0x48   :  { %870 = vmatprep.subr.mxu0 %v957_v19  ;;  %905 = vmatprep.subr.mxu1 %v957_v19  ;;  %s934_s6 = scalar_lea.vmem %s693_s5, 32  ;;  %p939_p1 = scmp.lt.s32.totalorder %s693_s5, %s693_s5 }
  0x49   :  { %871 = vmatpush3.msra.mxu0 %v504_v18  ;;  %902 = vmatprep.mubr.msk.f32.mxu0 %vm958_vm0, %v957_v19  ;;  %p935_p0 = scmp.ne.s32.totalorder %s693_s5, %s934_s6  ;;  %p940_p2 = scmp.lt.s32.totalorder %s934_s6, %s934_s6 }
  0x4a   :  { %872 = vmatprep.subr.mxu0 %v957_v19  ;;  %921 = vmatprep.mubr.msk.f32.mxu1 %vm958_vm0, %v957_v19 }
  0x4b   :  { %873 = vmatpush3.msra.mxu0 %v503_v20  ;;  %906 = vmatpush3.msra.mxu1 %v590_v35  ;;  %p941_p3 = por %p940_p2, %p939_p1 }
  0x4c   :  { %874 = vmatprep.subr.mxu0 %v957_v19  ;;  %907 = vmatprep.subr.mxu1 %v957_v19 }
  0x4d   :  { %875 = vmatpush3.msra.mxu0 %v502_v21  ;;  %908 = vmatpush3.msra.mxu1 %v589_v36  ;;  %p942_p4 = pnand %p941_p3, %p935_p0 }
  0x4e   :  { %876 = vmatprep.subr.mxu0 %v957_v19  ;;  %909 = vmatprep.subr.mxu1 %v957_v19 }
  0x4f   :  { %877 = vmatpush3.msra.mxu0 %v501_v22  ;;  %910 = vmatpush3.msra.mxu1 %v588_v37 }
  0x50   :  { %878 = vmatprep.subr.mxu0 %v957_v19  ;;  %911 = vmatprep.subr.mxu1 %v957_v19 }
  0x51   :  { %879 = vmatpush3.msra.mxu0 %v500_v23  ;;  %912 = vmatpush3.msra.mxu1 %v587_v38 }
  0x52   :  { %880 = vmatprep.subr.mxu0 %v957_v19  ;;  %913 = vmatprep.subr.mxu1 %v957_v19 }
  0x53   :  { %881 = vmatpush3.msra.mxu0 %v499_v24  ;;  %914 = vmatpush3.msra.mxu1 %v586_v39 }
  0x54   :  { %882 = vmatprep.subr.mxu0 %v957_v19  ;;  %915 = vmatprep.subr.mxu1 %v957_v19 }
  0x55   :  { %883 = vmatpush3.msra.mxu0 %v498_v25  ;;  %916 = vmatpush3.msra.mxu1 %v585_v59 }
  0x56   :  { %884 = vmatprep.subr.mxu0 %v957_v19  ;;  %917 = vmatprep.subr.mxu1 %v957_v19 }
  0x57   :  { %885 = vmatpush3.msra.mxu0 %v497_v26  ;;  %918 = vmatpush3.msra.mxu1 %v584_v60 }
  0x58   :  { %886 = vmatprep.subr.mxu0 %v957_v19  ;;  %919 = vmatprep.subr.mxu1 %v957_v19 }
  0x59   :  { %887 = vmatpush3.msra.mxu0 %v496_v27  ;;  %920 = vmatpush3.msra.mxu1 %v583_v61 }
  0x5a   :  { %888 = vmatprep.subr.mxu0 %v957_v19 }
  0x5b   :  { %889 = vmatpush3.msra.mxu0 %v495_v28 }
  0x5c   :  { %890 = vmatprep.subr.mxu0 %v957_v19 }
  0x5d   :  { %891 = vmatpush3.msra.mxu0 %v494_v29 }
  0x5e   :  { %892 = vmatprep.subr.mxu0 %v957_v19 }
  0x5f   :  { %893 = vmatpush3.msra.mxu0 %v493_v30 }
  0x60   :  { %894 = vmatprep.subr.mxu0 %v957_v19 }
  0x61   :  { %895 = vmatpush3.msra.mxu0 %v492_v31 }
  0x62   :  { %896 = vmatprep.subr.mxu0 %v957_v19 }
  0x63   :  { %897 = vmatpush3.msra.mxu0 %v491_v32 }
  0x64   :  { %898 = vmatprep.subr.mxu0 %v957_v19 }
  0x65   :  { %899 = vmatpush3.msra.mxu0 %v490_v33 }
  0x66   :  { %900 = vmatprep.subr.mxu0 %v957_v19 }
  0x67   :  { %901 = vmatpush3.msra.mxu0 %v489_v34 }
  0xe4   :  { %v736_v40 = vpop.f32.mrf.mxu0 }
  0xe6   :  { %v771_v41 = vpop.f32.mrf.mxu1  ;;  %v737_v42 = vpop.f32.mrf.mxu0 }
  0xe7   :  { %v738_v43 = vadd.f32 %v737_v42, %v736_v40 }
  0xe8   :  { %v772_v45 = vpop.f32.mrf.mxu1 }
  0xe9   :  { %v275_v46 = vadd.f32 %v738_v43, %v700_v44  ;;  %v773_v47 = vadd.f32 %v772_v45, %v771_v41 }
  0xeb   :  { %v345_v53 = vadd.f32 %v773_v47, %v275_v46 }
 0x107   :  { %v806_v48 = vpop.f32.mrf.mxu0  ;;  %v841_v49 = vpop.f32.mrf.mxu1 }
 0x109   :  { %v807_v50 = vpop.f32.mrf.mxu0  ;;  %v842_v52 = vpop.f32.mrf.mxu1 }
 0x10a   :  { %v808_v54 = vadd.f32 %v807_v50, %v806_v48  ;;  %v843_v56 = vadd.f32 %v842_v52, %v841_v49 }
 0x10c   :  { %v415_v55 = vadd.f32 %v808_v54, %v345_v53 }
 0x10e   :  { %v485_v57 = vadd.f32 %v843_v56, %v415_v55 }
 0x110   :  { %v488_v58 = vmax.f32 %v485_v57, 0.0 }
 0x112   :  { %903 = vmatmul.mubr.f32.vlgmr.msra.gmra.mxu0 %v488_v58 }
 0x1d2   :  { %v578_v63 = vpop.f32.mrf.mxu0 }
 0x1d3   :  { %v579_v0 = vadd.f32 %v701_v62, %v578_v63 }
 0x1d4   :  { %v904_v1 = vpop.f32.mrf.mxu0 }
 0x1d5   :  { %v582_v2 = vmax.f32 %v579_v0, 0.0 }
 0x1d7   :  { %922 = vmatmul.mubr.msk.f32.vlgmr.msra.gmra.mxu1 %vm598_vm1, %v582_v2 }
 0x297   :  { %v668_v4 = vpop.f32.mrf.mxu1 }
 0x298   :  { %v669_v5 = vadd.f32 %v702_v3, %v668_v4 }
 0x299   :  { %v923_v6 = vpop.f32.mrf.mxu1 }
 0x29a   :  { %v673_v7 = vsel %vm672_vm2, %v669_v5, -inf }
 0x29b   :  { %674 = vmax.xlane.f32.xlu0 %v673_v7 }
 0x324   :  { %v675_v8 = vpop.xlane.xlu0 %674 }
 0x325   :  { %v676_v9 = vsub.f32 %v669_v5, %v675_v8 }
 0x327   :  { %v677_v10 = vmul.f32 1.442695, %v676_v9 }
 0x329   :  { %930 = vpow2.f32 %v677_v10 }
 0x336   :  { %v931_v11 = vpop.eup %930 }
 0x337   :  { %v679_v51 = vsel %vm672_vm2, %v931_v11, 0.0 }
 0x338   :  { %680 = vadd.xlane.f32.xlu0 %v679_v51 }
 0x3c1   :  { %v681_v12 = vpop.xlane.xlu0 %680 }
 0x3c2   :  { %932 = vlog2.f32 %v681_v12 }
 0x3cf   :  { %v933_v13 = vpop.eup %932 }
 0x3d0   :  { %v683_v14 = vmul.f32 0.6931472, %v933_v13 }
 0x3d2   :  { %v684_v15 = vsub.f32 %v676_v9, %v683_v14 }
 0x3d4   :  { %685 = vst.msk [vmem:[#allocation2] sm:$0x3] %vm672_vm2, %v684_v15 }
 0x3d5   :  { %945 = shalt.err (!%p942_p4)
}
 0x3d6   :  { %695 = dma.vmem_to_hbm [thread:$0]  %s693_s5, 32, %s1516_s7, [#allocation3]  }
 0x3d7   :  { %954 = dma.done.wait [#allocation3], 32  }
 0x3d8   :  { %955 = vsyncadd [#allocation3], 4294967264 }
 0x3d9   :  { %699 = vsyncpa [#allocation3], 1 }

</bundles_post_ra>
